<compile_context>
chip_gen: v5e
topology: v5e:2x2
jax: 0.10.0
libtpu: 0.0.40
codegen_flags: <defaults>
</compile_context>

<pallas_src>
import jax
import jax.numpy as jnp
from jax.experimental import pallas as pl
from jax.experimental.pallas import tpu as pltpu

ENC_DIM = 384   # hard-coded in semanticmodelembeding (reshape to (-1, 1, 384))
SEQ_LEN = 32    # hard-coded in semanticmodelembeding (reshape to (-1, 32))


# ----------------------------- fused Pallas kernel ---------------------------

def _fused_itpa_kernel(na_ref, nb_ref, kern_ref, bias_ref, ctx_ref,
                       w1_ref, b1_ref, w2_ref, b2_ref, w3_ref, b3_ref, out_ref):
    """semantic attention + single-matmul-per-layer MLP head, one batch block."""
    BB, K, D = na_ref.shape

    # ---- cosine similarity s[b,k] = <na[b,k], nb[b]>, accumulated in 128-lane
    # chunks so the (BB,K,D) broadcast product never materializes in VMEM.
    s = jnp.zeros((BB, K), jnp.float32)
    for c0 in range(0, D, 128):
        c1 = min(c0 + 128, D)
        na_c = na_ref[:, :, c0:c1].astype(jnp.float32)      # bf16 -> f32 once
        nb_c = nb_ref[:, c0:c1].astype(jnp.float32)
        s = s + jnp.sum(na_c * nb_c[:, None, :], axis=-1)   # VPU mul + lane reduce

    # ---- attention weights: softmax((1-s) @ kernel + bias)
    #      == softmax(bias_eff - s @ kernel), bias_eff folded in the wrapper.
    # Tiny K x K contraction done on the VPU (broadcast-mul + sublane reduce).
    kern = kern_ref[...]                                     # (K, K) f32
    w = bias_ref[...] - jnp.sum(s[:, :, None] * kern[None, :, :], axis=1)  # (BB, K)
    w = w - jnp.max(w, axis=1, keepdims=True)
    e = jnp.exp(w)
    w = e / jnp.sum(e, axis=1, keepdims=True)

    # ---- weighted sum over K neighbours of the augmented context.
    # ctx_aug[b,k,:] = [phe[b] | spatial[b] | label_onehot[b,k]]; the softmax
    # weights sum to 1, so this reproduces torch.cat((phe, spatial, semantic))
    # without materializing a concat, and layer 1 becomes ONE MXU pass.
    act = jnp.sum(w[:, :, None] * ctx_ref[...].astype(jnp.float32), axis=1)  # (BB, DIN)

    def elu(v):
        # exp only on the clamped (<=0) branch; alpha = 1 (nn.ELU default).
        return jnp.where(v > 0, v, jnp.exp(jnp.minimum(v, 0.0)) - 1.0)

    # bf16 operands, f32 accumulation (MXU-native on v5e/v6e/v7x).
    h = jnp.dot(act.astype(jnp.bfloat16), w1_ref[...],
                preferred_element_type=jnp.float32) + b1_ref[...]
    h = elu(h)
    h = jnp.dot(h.astype(jnp.bfloat16), w2_ref[...],
                preferred_element_type=jnp.float32) + b2_ref[...]
    h = elu(h)
    # Dropout(p=0.5) is identity at inference.
    # Lane-dense (BB, C_pad=128) store; padded columns are zero-weight and
    # sliced off in the wrapper.
    out_ref[...] = jnp.dot(h.astype(jnp.bfloat16), w3_ref[...],
                           preferred_element_type=jnp.float32) + b3_ref[...]


def _choose_block_b(batch):
    """Batch block: multiple of 16 (bf16 sublane tile), <=256 rows (v7x/v5e VMEM
    budget), and ~ceil(B/2) so medium/large batches give >=2 parallel grid
    steps (both v7x TensorCores get work)."""
    half = -(-batch // 2)
    bb = ((half + 15) // 16) * 16
    return max(16, min(256, bb))


def fused_itpa_head(phe, spatial, normalize_a, normalize_b,
                    att_kernel, att_bias, context,
                    w1, b1, w2, b2, w3, b3):
    B, P_phe = phe.shape
    P_geo = spatial.shape[1]
    _, K, D = normalize_a.shape
    F = context.shape[-1]
    H1, H2, C = w1.shape[1], w2.shape[1], w3.shape[1]
    C_pad = ((C + 127) // 128) * 128
    DIN = P_phe + P_geo + F

    f32, bf16 = jnp.float32, jnp.bfloat16

    # Fold the constant '1 -' of the cosine distance into an effective bias:
    # (1 - s) @ K + b  ==  (b + ones @ K) - s @ K
    bias_eff = (att_bias + jnp.sum(att_kernel, axis=0)).reshape(1, K).astype(f32)

    # Augment the per-neighbour context with phe/spatial (see kernel comment).
    ctx_aug = jnp.concatenate([
        jnp.broadcast_to(phe[:, None, :].astype(f32), (B, K, P_phe)),
        jnp.broadcast_to(spatial[:, None, :].astype(f32), (B, K, P_geo)),
        context.astype(f32)], axis=-1)                               # (B, K, DIN)

    # Lane-dense classifier: pad w3/b3 columns to a multiple of 128.
    w3_pad = jnp.zeros((H2, C_pad), f32).at[:, :C].set(w3)
    b3_pad = jnp.zeros((1, C_pad), f32).at[0, :C].set(b3)

    block_b = _choose_block_b(B)
    B_pad = ((B + block_b - 1) // block_b) * block_b

    def pad_rows(a):
        if a.shape[0] == B_pad:
            return a
        return jnp.pad(a, [(0, B_pad - a.shape[0])] + [(0, 0)] * (a.ndim - 1))

    # bf16 for the dominant DMA streams (na is ~80% of per-row input bytes);
    # all accumulation stays f32 in-kernel.
    na_p = pad_rows(normalize_a.astype(bf16))
    nb_p = pad_rows(normalize_b.astype(bf16))
    ctx_p = pad_rows(ctx_aug.astype(bf16))

    grid = (B_pad // block_b,)
    out = pl.pallas_call(
        _fused_itpa_kernel,
        out_shape=jax.ShapeDtypeStruct((B_pad, C_pad), f32),
        grid_spec=pltpu.PrefetchScalarGridSpec(
            num_scalar_prefetch=0,
            grid=grid,
            in_specs=[
                pl.BlockSpec((block_b, K, D), lambda i: (i, 0, 0)),   # na (bf16)
                pl.BlockSpec((block_b, D), lambda i: (i, 0)),         # nb (bf16)
                pl.BlockSpec((K, K), lambda i: (0, 0)),               # kernel (resident)
                pl.BlockSpec((1, K), lambda i: (0, 0)),               # bias_eff
                pl.BlockSpec((block_b, K, DIN), lambda i: (i, 0, 0)), # ctx_aug (bf16)
                pl.BlockSpec((DIN, H1), lambda i: (0, 0)),            # w1 (resident)
                pl.BlockSpec((1, H1), lambda i: (0, 0)),
                pl.BlockSpec((H1, H2), lambda i: (0, 0)),
                pl.BlockSpec((1, H2), lambda i: (0, 0)),
                pl.BlockSpec((H2, C_pad), lambda i: (0, 0)),
                pl.BlockSpec((1, C_pad), lambda i: (0, 0)),
            ],
            out_specs=pl.BlockSpec((block_b, C_pad), lambda i: (i, 0)),
        ),
        compiler_params=pltpu.CompilerParams(
            dimension_semantics=("parallel",),          # batch blocks shard across TCs
            vmem_limit_bytes=32 * 1024 * 1024),         # explicit budget (v5e default 16 MiB)
    )(na_p, nb_p, att_kernel.astype(f32), bias_eff, ctx_p,
      w1.astype(bf16), b1.reshape(1, H1).astype(f32),
      w2.astype(bf16), b2.reshape(1, H2).astype(f32),
      w3_pad.astype(bf16), b3_pad)
    return out[:B, :C]


# --------------------------- plain-JAX glue / stubs --------------------------

def init_params(key, *, shape_input_phe, num_feat_geo, num_feat_text,
                num_nearest_text, num_classes, vocab=64, emb=48):
    ks = jax.random.split(key, 9)
    p = {}
    # TODO(synk): `base_encoder` is an external pretrained transformer (returns pooled
    # output [1] of dim 384); stubbed as token-embedding + masked mean pool + tanh pooler.
    p['tok_emb'] = jax.random.normal(ks[0], (vocab, emb), jnp.float32) * 0.02
    p['pool_w'] = jax.random.normal(ks[1], (emb, ENC_DIM), jnp.float32) * 0.05
    p['pool_b'] = jnp.zeros((ENC_DIM,), jnp.float32)
    # Attention (label='text') parameters: kernel (K,K), bias (K,)
    p['att_kernel'] = jax.random.normal(ks[2], (num_nearest_text, num_nearest_text), jnp.float32)
    p['att_bias'] = jax.random.normal(ks[3], (num_nearest_text,), jnp.float32)
    # TODO(synk): GCN_Encoder is not defined in the source; stubbed as a 2-layer
    # graph conv  A2 @ relu(A1 @ X @ W1) @ W2  with feature dim == num_feat_geo.
    p['gcn_w1'] = jax.random.normal(ks[4], (num_feat_geo, num_feat_geo), jnp.float32) * 0.3
    p['gcn_w2'] = jax.random.normal(ks[5], (num_feat_geo, num_feat_geo), jnp.float32) * 0.3
    # MLP head (nn.Linear default init style)
    din = shape_input_phe + num_feat_geo + num_feat_text

    def lin(k, fin, fout):
        lim = 1.0 / jnp.sqrt(jnp.float32(fin))
        kw, kb = jax.random.split(k)
        return (jax.random.uniform(kw, (fin, fout), jnp.float32, -lim, lim),
                jax.random.uniform(kb, (fout,), jnp.float32, -lim, lim))

    p['l1_w'], p['l1_b'] = lin(ks[6], din, 256)
    p['l2_w'], p['l2_b'] = lin(ks[7], 256, 128)
    p['l3_w'], p['l3_b'] = lin(ks[8], 128, num_classes)
    return p


def encoder_stub(params, ids, mask):
    emb = params['tok_emb'][ids]                              # (M, 32, E)
    m = mask.astype(jnp.float32)[:, :, None]
    pooled = jnp.sum(emb * m, axis=1) / jnp.maximum(jnp.sum(m, axis=1), 1.0)
    return jnp.tanh(pooled @ params['pool_w'] + params['pool_b'])   # (M, 384)


def gcn_stub(params, feat, adj1, adj2):
    h = jax.nn.relu(adj1 @ feat @ params['gcn_w1'])
    return adj2 @ h @ params['gcn_w2']                        # (N_nodes, num_feat_geo)


def l2_normalize(x, axis=-1, eps=1e-12):
    n = jnp.sqrt(jnp.sum(x * x, axis=axis, keepdims=True))
    return x / jnp.maximum(n, eps)


def itpa_forward(params, x, *, num_nearest_text):
    phe, idx, idx_k, att, att_k, label_onehot, node_idx, graph = x
    feat, adj1, adj2 = graph

    # --- spatial branch: GCN(x[-1][0], x[-1][1], x[-1][2])[x[-2]] ---
    spatial = gcn_stub(params, feat, adj1, adj2)[node_idx]    # (B, num_feat_geo)

    # --- semantic branch: semanticmodelembeding (encoders + L2 normalization) ---
    idx_k2 = idx_k.reshape(-1, SEQ_LEN).astype(jnp.int32)
    att_k2 = att_k.reshape(-1, SEQ_LEN).astype(jnp.int32)
    x1 = encoder_stub(params, idx.astype(jnp.int32), att.astype(jnp.int32))  # (B, 384)
    x2 = encoder_stub(params, idx_k2, att_k2)                 # (B*K, 384)
    # momentum m = 1.0 -> key encoder params identical to query encoder forever.
    normalize_b = l2_normalize(x1, axis=1)                    # (B, 384)
    normalize_a = l2_normalize(x2, axis=1).reshape(-1, num_nearest_text, ENC_DIM)

    # --- fused: cosine distance + attention + single-pass MLP head (Pallas) ---
    return fused_itpa_head(phe, spatial, normalize_a, normalize_b,
                           params['att_kernel'], params['att_bias'], label_onehot,
                           params['l1_w'], params['l1_b'],
                           params['l2_w'], params['l2_b'],
                           params['l3_w'], params['l3_b'])


# ---------------------------------- main --------------------------------------

if __name__ == "__main__":
    B = 4                    # batch
    K = 8                    # num_nearest_text
    SHAPE_INPUT_PHE = 16
    NUM_FEAT_TEXT = 16       # num_features_extras_text
    NUM_FEAT_GEO = 8         # num_features_extras_geo == config.hierarchy_classes[2]
    NUM_CLASSES = 10
    N_NODES = 12
    VOCAB = 64

    key = jax.random.PRNGKey(0)
    kp, *kd = jax.random.split(key, 10)
    params = init_params(kp, shape_input_phe=SHAPE_INPUT_PHE,
                         num_feat_geo=NUM_FEAT_GEO, num_feat_text=NUM_FEAT_TEXT,
                         num_nearest_text=K, num_classes=NUM_CLASSES, vocab=VOCAB)

    phe = jax.random.normal(kd[0], (B, SHAPE_INPUT_PHE), jnp.float32)
    idx = jax.random.randint(kd[1], (B, SEQ_LEN), 0, VOCAB)
    idx_k = jax.random.randint(kd[2], (B, K, SEQ_LEN), 0, VOCAB)
    att = jnp.ones((B, SEQ_LEN), jnp.int32)
    att_k = jnp.ones((B, K, SEQ_LEN), jnp.int32)
    label_onehot = jax.nn.one_hot(
        jax.random.randint(kd[3], (B, K), 0, NUM_FEAT_TEXT), NUM_FEAT_TEXT)   # (B, K, F)
    node_idx = jax.random.randint(kd[4], (B,), 0, N_NODES)
    feat = jax.random.normal(kd[5], (N_NODES, NUM_FEAT_GEO), jnp.float32)
    adj1 = jax.random.uniform(kd[6], (N_NODES, N_NODES), jnp.float32)
    adj2 = jax.random.uniform(kd[7], (N_NODES, N_NODES), jnp.float32)

    x = (phe, idx, idx_k, att, att_k, label_onehot, node_idx, (feat, adj1, adj2))

    out = itpa_forward(params, x, num_nearest_text=K)
    out = jax.block_until_ready(out)
    assert out.shape == (B, NUM_CLASSES), out.shape
    assert bool(jnp.all(jnp.isfinite(out)))
    print("KERNEL_OK")
</pallas_src>

<mosaic_0001>
module attributes {stable_mosaic.version = 11 : i64} {
  func.func @_fused_itpa_kernel(%arg0: i32, %arg1: memref<16x8x384xbf16, #tpu.memory_space<vmem>>, %arg2: memref<16x384xbf16, #tpu.memory_space<vmem>>, %arg3: memref<8x8xf32, #tpu.memory_space<vmem>>, %arg4: memref<1x8xf32, #tpu.memory_space<vmem>>, %arg5: memref<16x8x40xbf16, #tpu.memory_space<vmem>>, %arg6: memref<40x256xbf16, #tpu.memory_space<vmem>>, %arg7: memref<1x256xf32, #tpu.memory_space<vmem>>, %arg8: memref<256x128xbf16, #tpu.memory_space<vmem>>, %arg9: memref<1x128xf32, #tpu.memory_space<vmem>>, %arg10: memref<128x128xbf16, #tpu.memory_space<vmem>>, %arg11: memref<1x128xf32, #tpu.memory_space<vmem>>, %arg12: memref<16x128xf32, #tpu.memory_space<vmem>>) attributes {dimension_semantics = [#tpu.dimension_semantics<parallel>], iteration_bounds = array<i64: 1>, scalar_prefetch = 0 : i64, scratch_operands = 0 : i64, tpu.core_type = #tpu.core_type<tc>, window_params = [{transform_indices = @transform_0, window_bounds = array<i64: 16, 8, 384>}, {transform_indices = @transform_1, window_bounds = array<i64: 16, 384>}, {pipeline_mode = #tpu.pipeline_mode<synchronous>, transform_indices = @transform_2, window_bounds = array<i64: 8, 8>}, {pipeline_mode = #tpu.pipeline_mode<synchronous>, transform_indices = @transform_3, window_bounds = array<i64: 1, 8>}, {transform_indices = @transform_4, window_bounds = array<i64: 16, 8, 40>}, {pipeline_mode = #tpu.pipeline_mode<synchronous>, transform_indices = @transform_5, window_bounds = array<i64: 40, 256>}, {pipeline_mode = #tpu.pipeline_mode<synchronous>, transform_indices = @transform_6, window_bounds = array<i64: 1, 256>}, {pipeline_mode = #tpu.pipeline_mode<synchronous>, transform_indices = @transform_7, window_bounds = array<i64: 256, 128>}, {pipeline_mode = #tpu.pipeline_mode<synchronous>, transform_indices = @transform_8, window_bounds = array<i64: 1, 128>}, {pipeline_mode = #tpu.pipeline_mode<synchronous>, transform_indices = @transform_9, window_bounds = array<i64: 128, 128>}, {pipeline_mode = #tpu.pipeline_mode<synchronous>, transform_indices = @transform_10, window_bounds = array<i64: 1, 128>}, {transform_indices = @transform_11, window_bounds = array<i64: 16, 128>}]} {
    %cst = arith.constant 0.000000e+00 : f32
    %0 = vector.broadcast %cst : f32 to vector<16x8xf32>
    %c0 = arith.constant 0 : index
    %c0_0 = arith.constant 0 : index
    %c0_1 = arith.constant 0 : index
    %1 = vector.load %arg1[%c0, %c0_0, %c0_1] : memref<16x8x384xbf16, #tpu.memory_space<vmem>>, vector<16x8x128xbf16>
    %2 = arith.extf %1 : vector<16x8x128xbf16> to vector<16x8x128xf32>
    %c0_2 = arith.constant 0 : index
    %c0_3 = arith.constant 0 : index
    %3 = vector.load %arg2[%c0_2, %c0_3] : memref<16x384xbf16, #tpu.memory_space<vmem>>, vector<16x128xbf16>
    %4 = arith.extf %3 : vector<16x128xbf16> to vector<16x128xf32>
    %5 = vector.shape_cast %4 : vector<16x128xf32> to vector<16x1x128xf32>
    %6 = vector.broadcast %5 : vector<16x1x128xf32> to vector<16x8x128xf32>
    %7 = arith.mulf %2, %6 : vector<16x8x128xf32>
    %cst_4 = arith.constant dense<0.000000e+00> : vector<16x8xf32>
    %8 = vector.multi_reduction <add>, %7, %cst_4 [2] : vector<16x8x128xf32> to vector<16x8xf32>
    %9 = arith.addf %0, %8 : vector<16x8xf32>
    %c0_5 = arith.constant 0 : index
    %c0_6 = arith.constant 0 : index
    %c128 = arith.constant 128 : index
    %10 = vector.load %arg1[%c0_5, %c0_6, %c128] : memref<16x8x384xbf16, #tpu.memory_space<vmem>>, vector<16x8x128xbf16>
    %11 = arith.extf %10 : vector<16x8x128xbf16> to vector<16x8x128xf32>
    %c0_7 = arith.constant 0 : index
    %c128_8 = arith.constant 128 : index
    %12 = vector.load %arg2[%c0_7, %c128_8] : memref<16x384xbf16, #tpu.memory_space<vmem>>, vector<16x128xbf16>
    %13 = arith.extf %12 : vector<16x128xbf16> to vector<16x128xf32>
    %14 = vector.shape_cast %13 : vector<16x128xf32> to vector<16x1x128xf32>
    %15 = vector.broadcast %14 : vector<16x1x128xf32> to vector<16x8x128xf32>
    %16 = arith.mulf %11, %15 : vector<16x8x128xf32>
    %cst_9 = arith.constant dense<0.000000e+00> : vector<16x8xf32>
    %17 = vector.multi_reduction <add>, %16, %cst_9 [2] : vector<16x8x128xf32> to vector<16x8xf32>
    %18 = arith.addf %9, %17 : vector<16x8xf32>
    %c0_10 = arith.constant 0 : index
    %c0_11 = arith.constant 0 : index
    %c256 = arith.constant 256 : index
    %19 = vector.load %arg1[%c0_10, %c0_11, %c256] : memref<16x8x384xbf16, #tpu.memory_space<vmem>>, vector<16x8x128xbf16>
    %20 = arith.extf %19 : vector<16x8x128xbf16> to vector<16x8x128xf32>
    %c0_12 = arith.constant 0 : index
    %c256_13 = arith.constant 256 : index
    %21 = vector.load %arg2[%c0_12, %c256_13] : memref<16x384xbf16, #tpu.memory_space<vmem>>, vector<16x128xbf16>
    %22 = arith.extf %21 : vector<16x128xbf16> to vector<16x128xf32>
    %23 = vector.shape_cast %22 : vector<16x128xf32> to vector<16x1x128xf32>
    %24 = vector.broadcast %23 : vector<16x1x128xf32> to vector<16x8x128xf32>
    %25 = arith.mulf %20, %24 : vector<16x8x128xf32>
    %cst_14 = arith.constant dense<0.000000e+00> : vector<16x8xf32>
    %26 = vector.multi_reduction <add>, %25, %cst_14 [2] : vector<16x8x128xf32> to vector<16x8xf32>
    %27 = arith.addf %18, %26 : vector<16x8xf32>
    %c0_15 = arith.constant 0 : index
    %c0_16 = arith.constant 0 : index
    %28 = vector.load %arg3[%c0_15, %c0_16] : memref<8x8xf32, #tpu.memory_space<vmem>>, vector<8x8xf32>
    %c0_17 = arith.constant 0 : index
    %c0_18 = arith.constant 0 : index
    %29 = vector.load %arg4[%c0_17, %c0_18] : memref<1x8xf32, #tpu.memory_space<vmem>>, vector<1x8xf32>
    %30 = vector.shape_cast %27 : vector<16x8xf32> to vector<16x8x1xf32>
    %31 = vector.shape_cast %28 : vector<8x8xf32> to vector<1x8x8xf32>
    %32 = vector.broadcast %30 : vector<16x8x1xf32> to vector<16x8x8xf32>
    %33 = vector.broadcast %31 : vector<1x8x8xf32> to vector<16x8x8xf32>
    %34 = arith.mulf %32, %33 : vector<16x8x8xf32>
    %cst_19 = arith.constant dense<0.000000e+00> : vector<16x8xf32>
    %35 = vector.multi_reduction <add>, %34, %cst_19 [1] : vector<16x8x8xf32> to vector<16x8xf32>
    %36 = vector.broadcast %29 : vector<1x8xf32> to vector<16x8xf32>
    %37 = arith.subf %36, %35 : vector<16x8xf32>
    %cst_20 = arith.constant dense<0xFF800000> : vector<16xf32>
    %38 = vector.multi_reduction <maximumf>, %37, %cst_20 [1] : vector<16x8xf32> to vector<16xf32>
    %39 = vector.shape_cast %38 : vector<16xf32> to vector<16x1xf32>
    %40 = vector.broadcast %39 : vector<16x1xf32> to vector<16x8xf32>
    %41 = arith.subf %37, %40 : vector<16x8xf32>
    %42 = math.exp %41 : vector<16x8xf32>
    %cst_21 = arith.constant dense<0.000000e+00> : vector<16xf32>
    %43 = vector.multi_reduction <add>, %42, %cst_21 [1] : vector<16x8xf32> to vector<16xf32>
    %44 = vector.shape_cast %43 : vector<16xf32> to vector<16x1xf32>
    %45 = vector.broadcast %44 : vector<16x1xf32> to vector<16x8xf32>
    %46 = arith.divf %42, %45 : vector<16x8xf32>
    %47 = vector.shape_cast %46 : vector<16x8xf32> to vector<16x8x1xf32>
    %c0_22 = arith.constant 0 : index
    %c0_23 = arith.constant 0 : index
    %c0_24 = arith.constant 0 : index
    %48 = vector.load %arg5[%c0_22, %c0_23, %c0_24] : memref<16x8x40xbf16, #tpu.memory_space<vmem>>, vector<16x8x40xbf16>
    %49 = arith.extf %48 : vector<16x8x40xbf16> to vector<16x8x40xf32>
    %50 = vector.broadcast %47 : vector<16x8x1xf32> to vector<16x8x40xf32>
    %51 = arith.mulf %50, %49 : vector<16x8x40xf32>
    %cst_25 = arith.constant dense<0.000000e+00> : vector<16x40xf32>
    %52 = vector.multi_reduction <add>, %51, %cst_25 [1] : vector<16x8x40xf32> to vector<16x40xf32>
    %53 = arith.truncf %52 : vector<16x40xf32> to vector<16x40xbf16>
    %c0_26 = arith.constant 0 : index
    %c0_27 = arith.constant 0 : index
    %54 = vector.load %arg6[%c0_26, %c0_27] : memref<40x256xbf16, #tpu.memory_space<vmem>>, vector<40x256xbf16>
    %cst_28 = arith.constant dense<0.000000e+00> : vector<16x256xf32>
    %55 = tpu.matmul %53, %54, %cst_28 {dimension_numbers = #tpu.dot_dimension_numbers<[1], [0], [0], [1], [0, 0, 1, 1], [], []>} : vector<16x40xbf16>, vector<40x256xbf16>, vector<16x256xf32> -> vector<16x256xf32>
    %c0_29 = arith.constant 0 : index
    %c0_30 = arith.constant 0 : index
    %56 = vector.load %arg7[%c0_29, %c0_30] : memref<1x256xf32, #tpu.memory_space<vmem>>, vector<1x256xf32>
    %57 = vector.broadcast %56 : vector<1x256xf32> to vector<16x256xf32>
    %58 = arith.addf %55, %57 : vector<16x256xf32>
    %cst_31 = arith.constant 0.000000e+00 : f32
    %59 = vector.broadcast %cst_31 : f32 to vector<16x256xf32>
    %60 = arith.cmpf ogt, %58, %59 : vector<16x256xf32>
    %cst_32 = arith.constant 0.000000e+00 : f32
    %61 = vector.broadcast %cst_32 : f32 to vector<16x256xf32>
    %62 = arith.minimumf %58, %61 : vector<16x256xf32>
    %63 = math.exp %62 : vector<16x256xf32>
    %cst_33 = arith.constant 1.000000e+00 : f32
    %64 = vector.broadcast %cst_33 : f32 to vector<16x256xf32>
    %65 = arith.subf %63, %64 : vector<16x256xf32>
    %66 = arith.select %60, %58, %65 : vector<16x256xi1>, vector<16x256xf32>
    %67 = arith.truncf %66 : vector<16x256xf32> to vector<16x256xbf16>
    %c0_34 = arith.constant 0 : index
    %c0_35 = arith.constant 0 : index
    %68 = vector.load %arg8[%c0_34, %c0_35] : memref<256x128xbf16, #tpu.memory_space<vmem>>, vector<256x128xbf16>
    %cst_36 = arith.constant dense<0.000000e+00> : vector<16x128xf32>
    %69 = tpu.matmul %67, %68, %cst_36 {dimension_numbers = #tpu.dot_dimension_numbers<[1], [0], [0], [1], [0, 0, 1, 1], [], []>} : vector<16x256xbf16>, vector<256x128xbf16>, vector<16x128xf32> -> vector<16x128xf32>
    %c0_37 = arith.constant 0 : index
    %c0_38 = arith.constant 0 : index
    %70 = vector.load %arg9[%c0_37, %c0_38] : memref<1x128xf32, #tpu.memory_space<vmem>>, vector<1x128xf32>
    %71 = vector.broadcast %70 : vector<1x128xf32> to vector<16x128xf32>
    %72 = arith.addf %69, %71 : vector<16x128xf32>
    %cst_39 = arith.constant 0.000000e+00 : f32
    %73 = vector.broadcast %cst_39 : f32 to vector<16x128xf32>
    %74 = arith.cmpf ogt, %72, %73 : vector<16x128xf32>
    %cst_40 = arith.constant 0.000000e+00 : f32
    %75 = vector.broadcast %cst_40 : f32 to vector<16x128xf32>
    %76 = arith.minimumf %72, %75 : vector<16x128xf32>
    %77 = math.exp %76 : vector<16x128xf32>
    %cst_41 = arith.constant 1.000000e+00 : f32
    %78 = vector.broadcast %cst_41 : f32 to vector<16x128xf32>
    %79 = arith.subf %77, %78 : vector<16x128xf32>
    %80 = arith.select %74, %72, %79 : vector<16x128xi1>, vector<16x128xf32>
    %81 = arith.truncf %80 : vector<16x128xf32> to vector<16x128xbf16>
    %c0_42 = arith.constant 0 : index
    %c0_43 = arith.constant 0 : index
    %82 = vector.load %arg10[%c0_42, %c0_43] : memref<128x128xbf16, #tpu.memory_space<vmem>>, vector<128x128xbf16>
    %cst_44 = arith.constant dense<0.000000e+00> : vector<16x128xf32>
    %83 = tpu.matmul %81, %82, %cst_44 {dimension_numbers = #tpu.dot_dimension_numbers<[1], [0], [0], [1], [0, 0, 1, 1], [], []>} : vector<16x128xbf16>, vector<128x128xbf16>, vector<16x128xf32> -> vector<16x128xf32>
    %c0_45 = arith.constant 0 : index
    %c0_46 = arith.constant 0 : index
    %84 = vector.load %arg11[%c0_45, %c0_46] : memref<1x128xf32, #tpu.memory_space<vmem>>, vector<1x128xf32>
    %85 = vector.broadcast %84 : vector<1x128xf32> to vector<16x128xf32>
    %86 = arith.addf %83, %85 : vector<16x128xf32>
    %c0_47 = arith.constant 0 : index
    %c0_48 = arith.constant 0 : index
    %87 = vector.load %arg12[%c0_47, %c0_48] : memref<16x128xf32, #tpu.memory_space<vmem>>, vector<16x128xf32>
    tpu.vector_store %arg12[%c0_47, %c0_48], %86 {strides = array<i32>} : memref<16x128xf32, #tpu.memory_space<vmem>>, vector<16x128xf32>,
    return
  }
  func.func @transform_0(%arg0: i32) -> (i32, i32, i32) {
    %c0_i32 = arith.constant 0 : i32
    %c0_i32_0 = arith.constant 0 : i32
    %c0_i32_1 = arith.constant 0 : i32
    return %arg0, %c0_i32, %c0_i32_0 : i32, i32, i32
  }
  func.func @transform_1(%arg0: i32) -> (i32, i32) {
    %c0_i32 = arith.constant 0 : i32
    %c0_i32_0 = arith.constant 0 : i32
    return %arg0, %c0_i32 : i32, i32
  }
  func.func @transform_2(%arg0: i32) -> (i32, i32) {
    %c0_i32 = arith.constant 0 : i32
    %c0_i32_0 = arith.constant 0 : i32
    %c0_i32_1 = arith.constant 0 : i32
    return %c0_i32, %c0_i32_0 : i32, i32
  }
  func.func @transform_3(%arg0: i32) -> (i32, i32) {
    %c0_i32 = arith.constant 0 : i32
    %c0_i32_0 = arith.constant 0 : i32
    %c0_i32_1 = arith.constant 0 : i32
    return %c0_i32, %c0_i32_0 : i32, i32
  }
  func.func @transform_4(%arg0: i32) -> (i32, i32, i32) {
    %c0_i32 = arith.constant 0 : i32
    %c0_i32_0 = arith.constant 0 : i32
    %c0_i32_1 = arith.constant 0 : i32
    return %arg0, %c0_i32, %c0_i32_0 : i32, i32, i32
  }
  func.func @transform_5(%arg0: i32) -> (i32, i32) {
    %c0_i32 = arith.constant 0 : i32
    %c0_i32_0 = arith.constant 0 : i32
    %c0_i32_1 = arith.constant 0 : i32
    return %c0_i32, %c0_i32_0 : i32, i32
  }
  func.func @transform_6(%arg0: i32) -> (i32, i32) {
    %c0_i32 = arith.constant 0 : i32
    %c0_i32_0 = arith.constant 0 : i32
    %c0_i32_1 = arith.constant 0 : i32
    return %c0_i32, %c0_i32_0 : i32, i32
  }
  func.func @transform_7(%arg0: i32) -> (i32, i32) {
    %c0_i32 = arith.constant 0 : i32
    %c0_i32_0 = arith.constant 0 : i32
    %c0_i32_1 = arith.constant 0 : i32
    return %c0_i32, %c0_i32_0 : i32, i32
  }
  func.func @transform_8(%arg0: i32) -> (i32, i32) {
    %c0_i32 = arith.constant 0 : i32
    %c0_i32_0 = arith.constant 0 : i32
    %c0_i32_1 = arith.constant 0 : i32
    return %c0_i32, %c0_i32_0 : i32, i32
  }
  func.func @transform_9(%arg0: i32) -> (i32, i32) {
    %c0_i32 = arith.constant 0 : i32
    %c0_i32_0 = arith.constant 0 : i32
    %c0_i32_1 = arith.constant 0 : i32
    return %c0_i32, %c0_i32_0 : i32, i32
  }
  func.func @transform_10(%arg0: i32) -> (i32, i32) {
    %c0_i32 = arith.constant 0 : i32
    %c0_i32_0 = arith.constant 0 : i32
    %c0_i32_1 = arith.constant 0 : i32
    return %c0_i32, %c0_i32_0 : i32, i32
  }
  func.func @transform_11(%arg0: i32) -> (i32, i32) {
    %c0_i32 = arith.constant 0 : i32
    %c0_i32_0 = arith.constant 0 : i32
    return %arg0, %c0_i32 : i32, i32
  }
}

</mosaic_0001>

<bundles_post_ra>
// kernel: tpu_custom_call.1
= control target key start
LH: loop header
LB: loop body
LE: loop exit
PB: predicated region body
PF: predicated region fallthrough
CT: control target
= control target key end

     0   :  { %16 = vsyncpa [#allocation3], 0  ;;  %s2319_s0 = inlined_call_operand.hbm [shape: bf16[16,8,384], index: 0, kind: input, shape index: {}]   ;;  %s2320_s1 = inlined_call_operand.hbm [shape: bf16[16,384], index: 1, kind: input, shape index: {}]   ;;  %s2321_s2 = inlined_call_operand.hbm [shape: f32[8,8], index: 2, kind: input, shape index: {}]   ;;  %s2322_s3 = inlined_call_operand.vmem [shape: f32[1,8], index: 3, kind: input, shape index: {}]   ;;  %s2323_s4 = inlined_call_operand.hbm [shape: bf16[16,8,40], index: 4, kind: input, shape index: {}]   ;;  %s2324_s5 = inlined_call_operand.hbm [shape: bf16[40,256], index: 5, kind: input, shape index: {}]   ;;  %s2325_s6 = inlined_call_operand.vmem [shape: f32[1,256], index: 6, kind: input, shape index: {}]   ;;  %s2326_s7 = inlined_call_operand.hbm [shape: bf16[256,128], index: 7, kind: input, shape index: {}]   ;;  %s2327_s8 = inlined_call_operand.vmem [shape: f32[1,128], index: 8, kind: input, shape index: {}]   ;;  %s2328_s9 = inlined_call_operand.hbm [shape: bf16[128,128], index: 9, kind: input, shape index: {}]   ;;  %s2329_s10 = inlined_call_operand.vmem [shape: f32[1,128], index: 10, kind: input, shape index: {}]   ;;  %s2330_s11 = inlined_call_operand.hbm [shape: f32[16,128], index: 11, kind: output, shape index: {}]  }
   0x1   :  { %17 = vsyncpa [#allocation6], 0 }
   0x2   :  { %18 = vsyncpa [#allocation9], 0 }
   0x3   :  { %19 = vsyncpa [#allocation12], 0 }
   0x4   :  { %20 = vsyncpa [#allocation4], 0  ;;  %s38_s19 = sshll.u32 %s2320_s1, 4  ;;  %s1958_s20 = smov [#allocation5]   ;;  %s39_s19 = int_to_ptr.hbm [resolvable:$true] %s38_s19 }
   0x5   :  { %s40_s21 = sshll.u32 %s1958_s20, 4  ;;  %s64_s24 = sshll.u32 %s2323_s4, 4  ;;  %s41_s21 = int_to_ptr.vmem [resolvable:$true] %s40_s21  ;;  %s65_s24 = int_to_ptr.hbm [resolvable:$true] %s64_s24 }
   0x6   :  { %s1959_s25 = smov 192   ;;  %s1960_s26 = smov 12  }
   0x7   :  { %46 = dma.hbm_to_vmem [thread:$0]  %s39_s19, 384, %s41_s21, [#allocation6], %s1959_s25, %s1959_s25, %s1960_s26  }
   0x8   :  { %s1961_s27 = smov [#allocation8]   ;;  %s1962_s29 = smov 64  }
   0x9   :  { %s66_s28 = sshll.u32 %s1961_s27, 4  ;;  %s1963_s30 = smov 4   ;;  %s67_s28 = int_to_ptr.vmem [resolvable:$true] %s66_s28 }
   0xa   :  { %72 = dma.hbm_to_vmem [thread:$0]  %s65_s24, 1024, %s67_s28, [#allocation9], %s1962_s29, %s1962_s29, %s1963_s30  }
   0xb   :  { %s92_s13 = sshll.u32 %s2326_s7, 4  ;;  %s1964_s14 = smov [#allocation11]   ;;  %s93_s13 = int_to_ptr.hbm [resolvable:$true] %s92_s13 }
   0xc   :  { %s94_s4 = sshll.u32 %s1964_s14, 4  ;;  %s25_s17 = sshll.u32 %s2319_s0, 4  ;;  %s95_s4 = int_to_ptr.vmem [resolvable:$true] %s94_s4  ;;  %s26_s17 = int_to_ptr.hbm [resolvable:$true] %s25_s17 }
   0xd   :  { %100 = dma.hbm_to_vmem [thread:$0]  %s93_s13, 2048, %s95_s4, [#allocation12], %s1962_s29, %s1962_s29, %s1963_s30  }
   0xe   :  { %s1965_s18 = smov [#allocation2]   ;;  %s52_s22 = sshll.u32 %s2321_s2, 4  ;;  %s53_s22 = int_to_ptr.hbm [resolvable:$true] %s52_s22 }
   0xf   :  { %s27_s19 = sshll.u32 %s1965_s18, 4  ;;  %s77_s24 = sshll.u32 %s2324_s5, 4  ;;  %s28_s19 = int_to_ptr.vmem [resolvable:$true] %s27_s19  ;;  %s78_s24 = int_to_ptr.hbm [resolvable:$true] %s77_s24 }
  0x10   :  { %33 = dma.hbm_to_vmem [thread:$0]  %s26_s17, 3072, %s28_s19, [#allocation3], %s1959_s25, %s1959_s25, %s1960_s26  }
  0x11   :  { %s1966_s27 = smov [#allocation7]   ;;  %s1967_s28 = smov [#allocation10]  }
  0x12   :  { %s54_s0 = sshll.u32 %s1966_s27, 4  ;;  %s79_s1 = sshll.u32 %s1967_s28, 4  ;;  %s55_s0 = int_to_ptr.vmem [resolvable:$true] %s54_s0  ;;  %s80_s1 = int_to_ptr.vmem [resolvable:$true] %s79_s1 }
  0x13   :  { %57 = dma.hbm_to_vmem [thread:$0]  %s53_s22, 128, %s55_s0, [#allocation6]  }
  0x14   :  { %s1968_s12 = smov 128   ;;  %s1969_s13 = smov 8  }
  0x15   :  { %85 = dma.hbm_to_vmem [thread:$0]  %s78_s24, 640, %s80_s1, [#allocation9], %s1968_s12, %s1968_s12, %s1969_s13  }
  0x16   :  { %s107_s26 = sshll.u32 %s2328_s9, 4  ;;  %s1970_s5 = smov [#allocation13]   ;;  %s108_s26 = int_to_ptr.hbm [resolvable:$true] %s107_s26 }
  0x17   :  { %s109_s14 = sshll.u32 %s1970_s5, 4  ;;  %s110_s14 = int_to_ptr.vmem [resolvable:$true] %s109_s14 }
  0x18   :  { %115 = dma.hbm_to_vmem [thread:$0]  %s108_s26, 1024, %s110_s14, [#allocation12], %s1962_s29, %s1962_s29, %s1963_s30  }
  0x19   :  { %1948 = dma.done.wait [#allocation3], 3072  }
  0x1a   :  { %1949 = vsyncadd [#allocation3], 4294964224 }
  0x1b   :  { %1950 = dma.done.wait [#allocation6], 512  }
  0x1c   :  { %1951 = vsyncadd [#allocation6], 4294966784 }
  0x1d   :  { %1952 = dma.done.wait [#allocation9], 1664  }
  0x1e   :  { %1953 = vsyncadd [#allocation9], 4294965632 }
  0x1f   :  { %1954 = dma.done.wait [#allocation12], 3072  }
  0x20   :  { %1955 = vsyncadd [#allocation12], 4294964224  ;;  %v2065_v0 = vld [vmem:[#allocation2 + $0x4] sm:$0xff]   ;;  %v180_v5 = vld [vmem:[#allocation5 + $0xc] sm:$0xff]   ;;  %vm609_vm0 = vcmask 64512   ;;  %vm741_vm1 = vcmask 1041409  }
  0x21   :  { %v2067_v1 = vld [vmem:[#allocation5 + $0x4] sm:$0xff]   ;;  %v311_v3 = vunpack.c.l.bf16 %v2065_v0  ;;  %v147_v6 = vld [vmem:[#allocation2] sm:$0xf]  ;;  %v2073_v9 = vunpack.c.l.bf16 %v180_v5  ;;  %v2081_v16 = vld [vmem:[#allocation2 + $0x10] sm:$0xff]   ;;  %v2084_v18 = vunpack.c.h.bf16 %v180_v5  ;;  %vm743_vm2 = vcmask 1042434   ;;  %s1971_s16 = smov [#allocation14]  }
  0x22   :  { %v155_v2 = vld [vmem:[#allocation2 + $0x60] sm:$0xff]   ;;  %v2071_v4 = vunpack.c.l.bf16 %v2067_v1  ;;  %v163_v10 = vunpack.c.l.bf16 %v147_v6  ;;  %v156_v20 = vld [vmem:[#allocation2 + $0x6c] sm:$0xff]   ;;  %v312_v23 = vunpack.c.l.bf16 %v2081_v16  ;;  %v149_v34 = vld [vmem:[#allocation2 + $0x18] sm:$0xff]   ;;  %vm745_vm3 = vcmask 1043459   ;;  %s1511_s17 = sshll.u32 %s1971_s16, 4  ;;  %s1513_s20 = sshll.u32 %s2330_s11, 4  ;;  %s1512_s17 = int_to_ptr.vmem [resolvable:$true] %s1511_s17  ;;  %s1514_s20 = int_to_ptr.hbm [resolvable:$true] %s1513_s20 }
  0x23   :  { %v179_v7 = vld [vmem:[#allocation5] sm:$0xf]  ;;  %v171_v8 = vunpack.c.l.bf16 %v155_v2  ;;  %v207_v14 = vperm.slane %v2073_v9, 0  ;;  %v192_v17 = vrot.slane %v2073_v9, 1  ;;  %v172_v25 = vunpack.c.l.bf16 %v156_v20  ;;  %v148_v36 = vld [vmem:[#allocation2 + $0xc] sm:$0xf] }
  0x24   :  { %v2075_v11 = vunpack.c.l.bf16 %v179_v7  ;;  %v347_v12 = vperm.slane %v2071_v4, 0  ;;  %v333_v13 = vrot.slane %v2071_v4, 1  ;;  %v319_v27 = vunpack.c.h.bf16 %v155_v2  ;;  %v2093_v48 = vld [vmem:[#allocation2 + $0x7c] sm:$0xff]   ;;  %v2096_v50 = vld [vmem:[#allocation2 + $0x74] sm:$0xff]   ;;  %v2102_v62 = vld [vmem:[#allocation2 + $0x28] sm:$0xff]  }
  0x25   :  { %v239_v21 = vmul.f32 %v207_v14, %v171_v8  ;;  %v208_v26 = vperm.slane %v192_v17, 0  ;;  %v355_v28 = vperm.slane %v2084_v18, 0  ;;  %v340_v33 = vrot.slane %v2084_v18, 1  ;;  %v158_v2 = vld [vmem:[#allocation2 + $0x84] sm:$0xff]  }
  0x26   :  { %v199_v15 = vperm.slane %v2075_v11, 0  ;;  %v379_v19 = vmul.f32 %v347_v12, %v311_v3  ;;  %v348_v24 = vperm.slane %v333_v13, 0  ;;  %v186_v30 = vrot.slane %v2075_v11, 2  ;;  %v2105_v3 = vld [vmem:[#allocation2 + $0x20] sm:$0xff]  }
  0x27   :  { %263 = vadd.xlane.f32.xlu1 %v239_v21  ;;  %v240_v31 = vmul.f32 %v208_v26, %v172_v25  ;;  %v387_v32 = vmul.f32 %v355_v28, %v319_v27  ;;  %v185_v35 = vrot.slane %v2075_v11, 1  ;;  %v165_v37 = vunpack.c.l.bf16 %v149_v34  ;;  %v476_v21 = vld [vmem:[#allocation5 + $0x14] sm:$0xf] }
  0x28   :  { %v231_v22 = vmul.f32 %v199_v15, %v163_v10  ;;  %395 = vadd.xlane.f32.xlu2 %v379_v19  ;;  %v380_v29 = vmul.f32 %v348_v24, %v312_v23  ;;  %v201_v38 = vperm.slane %v186_v30, 0  ;;  %v320_v39 = vunpack.c.h.bf16 %v156_v20 }
  0x29   :  { %v356_v40 = vperm.slane %v340_v33, 0  ;;  %v164_v41 = vunpack.c.l.bf16 %v148_v36  ;;  %v200_v42 = vperm.slane %v185_v35, 0  ;;  %v341_v44 = vrot.slane %v2084_v18, 2  ;;  %v151_v33 = vld [vmem:[#allocation2 + $0x30] sm:$0xff]  }
  0x2a   :  { %247 = vadd.xlane.f32.xlu0 %v231_v22  ;;  %v233_v43 = vmul.f32 %v201_v38, %v165_v37  ;;  %v334_v47 = vrot.slane %v2071_v4, 2  ;;  %v193_v49 = vrot.slane %v2073_v9, 2  ;;  %v321_v51 = vunpack.c.l.bf16 %v2093_v48 }
  0x2b   :  { %v388_v45 = vmul.f32 %v356_v40, %v320_v39  ;;  %v232_v46 = vmul.f32 %v200_v42, %v164_v41  ;;  %v357_v52 = vperm.slane %v341_v44, 0  ;;  %v313_v53 = vunpack.c.h.bf16 %v149_v34  ;;  %v2125_v44 = vld [vmem:[#allocation2 + $0x94] sm:$0xff]  }
  0x2c   :  { %v349_v54 = vperm.slane %v334_v47, 0  ;;  %v173_v55 = vunpack.c.h.bf16 %v2096_v50  ;;  %v209_v56 = vperm.slane %v193_v49, 0  ;;  %v335_v58 = vrot.slane %v2071_v4, 3 }
  0x2d   :  { %v389_v57 = vmul.f32 %v357_v52, %v321_v51  ;;  %v194_v61 = vrot.slane %v2073_v9, 3  ;;  %v187_v63 = vrot.slane %v2075_v11, 3  ;;  %v314_v5 = vunpack.c.l.bf16 %v2102_v62 }
  0x2e   :  { %v381_v59 = vmul.f32 %v349_v54, %v313_v53  ;;  %v241_v60 = vmul.f32 %v209_v56, %v173_v55  ;;  %v350_v6 = vperm.slane %v335_v58, 0  ;;  %v2109_v7 = vunpack.c.h.bf16 %v2067_v1 }
  0x2f   :  { %265 = vadd.xlane.f32.xlu1 %v240_v31  ;;  %v174_v8 = vunpack.c.l.bf16 %v158_v2  ;;  %v210_v10 = vperm.slane %v194_v61, 0  ;;  %v166_v12 = vunpack.c.h.bf16 %v2105_v3  ;;  %v202_v13 = vperm.slane %v187_v63, 0 }
  0x30   :  { %397 = vadd.xlane.f32.xlu2 %v380_v29  ;;  %v382_v14 = vmul.f32 %v350_v6, %v314_v5  ;;  %v481_v15 = vrot.slane %v2109_v7, 1  ;;  %v342_v20 = vrot.slane %v2084_v18, 3  ;;  %v459_v22 = vunpack.c.h.bf16 %v2065_v0  ;;  %v451_v0 = vld [vmem:[#allocation2 + $0x68] sm:$0xf] }
  0x31   :  { %v242_v17 = vmul.f32 %v210_v10, %v174_v8  ;;  %v234_v19 = vmul.f32 %v202_v13, %v166_v12  ;;  %v460_v1 = vunpack.c.h.bf16 %v2081_v16  ;;  %v495_v24 = vperm.slane %v2109_v7, 0 }
  0x32   :  { %411 = vadd.xlane.f32.xlu0 %v387_v32  ;;  %v496_v23 = vperm.slane %v481_v15, 0  ;;  %v322_v25 = vunpack.c.h.bf16 %v158_v2  ;;  %v358_v26 = vperm.slane %v342_v20, 0  ;;  %v2117_v27 = vunpack.c.l.bf16 %v476_v21  ;;  %v160_v20 = vld [vmem:[#allocation2 + $0x9c] sm:$0xf] }
  0x33   :  { %v188_v29 = vrot.slane %v2075_v11, 4  ;;  %v527_v30 = vmul.f32 %v495_v24, %v459_v22  ;;  %v167_v16 = vunpack.c.l.bf16 %v151_v33  ;;  %v468_v35 = vunpack.c.l.bf16 %v2096_v50 }
  0x34   :  { %v528_v28 = vmul.f32 %v496_v23, %v460_v1  ;;  %v390_v31 = vmul.f32 %v358_v26, %v322_v25  ;;  %v488_v32 = vrot.slane %v2117_v27, 1  ;;  %v467_v37 = vunpack.c.l.bf16 %v451_v0 }
  0x35   :  { %v203_v34 = vperm.slane %v188_v29, 0  ;;  %v503_v38 = vperm.slane %v2117_v27, 0  ;;  %v343_v40 = vrot.slane %v2084_v18, 4  ;;  %v323_v47 = vunpack.c.l.bf16 %v2125_v44 }
  0x36   :  { %v504_v36 = vperm.slane %v488_v32, 0  ;;  %v315_v50 = vunpack.c.h.bf16 %v151_v33  ;;  %v189_v55 = vrot.slane %v2075_v11, 5  ;;  %v489_v58 = vrot.slane %v2117_v27, 2 }
  0x37   :  { %413 = vadd.xlane.f32.xlu1 %v388_v45  ;;  %v235_v39 = vmul.f32 %v203_v34, %v167_v16  ;;  %v535_v42 = vmul.f32 %v503_v38, %v467_v37  ;;  %v195_v45 = vrot.slane %v2073_v9, 4  ;;  %v359_v49 = vperm.slane %v343_v40, 0 }
  0x38   :  { %251 = vadd.xlane.f32.xlu2 %v233_v43  ;;  %v536_v41 = vmul.f32 %v504_v36, %v468_v35  ;;  %v336_v43 = vrot.slane %v2071_v4, 4  ;;  %v204_v63 = vperm.slane %v189_v55, 0  ;;  %v469_v2 = vunpack.c.h.bf16 %v2093_v48 }
  0x39   :  { %v211_v53 = vperm.slane %v195_v45, 0  ;;  %v391_v54 = vmul.f32 %v359_v49, %v323_v47  ;;  %v505_v5 = vperm.slane %v489_v58, 0  ;;  %v461_v6 = vunpack.c.l.bf16 %v2105_v3  ;;  %v447_v58 = vld [vmem:[#allocation2 + $0x38] sm:$0xf] }
  0x3a   :  { %249 = vadd.xlane.f32.xlu0 %v232_v46  ;;  %v159_v46 = vld [vmem:[#allocation2 + $0x8c] sm:$0xff]   ;;  %v351_v51 = vperm.slane %v336_v43, 0  ;;  %v344_v12 = vrot.slane %v2084_v18, 5  ;;  %v337_v15 = vrot.slane %v2071_v4, 5  ;;  %v176_v1 = vunpack.c.l.bf16 %v160_v20  ;;  %v161_v43 = vld [vmem:[#allocation2 + $0xa8] sm:$0xf] }
  0x3b   :  { %v175_v52 = vunpack.c.h.bf16 %v159_v46  ;;  %v537_v13 = vmul.f32 %v505_v5, %v469_v2  ;;  %v190_v25 = vrot.slane %v2075_v11, 6  ;;  %v490_v29 = vrot.slane %v2117_v27, 3 }
  0x3c   :  { %v383_v56 = vmul.f32 %v351_v51, %v315_v50  ;;  %v360_v48 = vperm.slane %v344_v12, 0  ;;  %v352_v22 = vperm.slane %v337_v15, 0  ;;  %v470_v0 = vunpack.c.l.bf16 %v159_v46  ;;  %v162_v15 = vld [vmem:[#allocation2 + $0xb4] sm:$0xf] }
  0x3d   :  { %v205_v33 = vperm.slane %v190_v25, 0  ;;  %v506_v16 = vperm.slane %v490_v29, 0  ;;  %v462_v34 = vunpack.c.h.bf16 %v2102_v62  ;;  %v345_v37 = vrot.slane %v2084_v18, 6  ;;  %v448_v25 = vld [vmem:[#allocation2 + $0x44] sm:$0xf] }
  0x3e   :  { %v338_v40 = vrot.slane %v2071_v4, 6  ;;  %v177_v49 = vunpack.c.l.bf16 %v161_v43  ;;  %v491_v55 = vrot.slane %v2117_v27, 4  ;;  %v463_v2 = vunpack.c.l.bf16 %v447_v58 }
  0x3f   :  { %399 = vadd.xlane.f32.xlu1 %v381_v59  ;;  %v152_v59 = vld [vmem:[#allocation2 + $0x3c] sm:$0xff]   ;;  %v538_v38 = vmul.f32 %v506_v16, %v470_v0  ;;  %v361_v46 = vperm.slane %v345_v37, 0  ;;  %v339_v12 = vrot.slane %v2071_v4, 7  ;;  %v492_v4 = vrot.slane %v2117_v27, 5 }
  0x40   :  { %415 = vadd.xlane.f32.xlu2 %v389_v57  ;;  %v243_v57 = vmul.f32 %v211_v53, %v175_v52  ;;  %v168_v61 = vunpack.c.l.bf16 %v152_v59  ;;  %v316_v3 = vunpack.c.h.bf16 %v152_v59  ;;  %v353_v47 = vperm.slane %v338_v40, 0  ;;  %v450_v37 = vld [vmem:[#allocation2 + $0x5c] sm:$0xf] }
  0x41   :  { %v191_v52 = vrot.slane %v2075_v11, 7  ;;  %v346_v11 = vrot.slane %v2084_v18, 7  ;;  %v486_v18 = vrot.slane %v2109_v7, 6  ;;  %v494_v0 = vrot.slane %v2117_v27, 7 }
  0x42   :  { %267 = vadd.xlane.f32.xlu0 %v241_v60  ;;  %v482_v60 = vrot.slane %v2109_v7, 2  ;;  %v236_v10 = vmul.f32 %v204_v63, %v168_v61  ;;  %v384_v26 = vmul.f32 %v352_v22, %v316_v3  ;;  %v471_v61 = vunpack.c.h.bf16 %v2125_v44 }
  0x43   :  { %v507_v63 = vperm.slane %v491_v55, 0  ;;  %v362_v20 = vperm.slane %v346_v11, 0  ;;  %v466_v40 = vunpack.c.l.bf16 %v450_v37  ;;  %vm747_vm4 = vcmask 1044484  }
  0x44   :  { %v497_v8 = vperm.slane %v482_v60, 0  ;;  %v206_v60 = vperm.slane %v191_v52, 0  ;;  %vm749_vm5 = vcmask 1045509   ;;  %vm751_vm6 = vcmask 1046534  }
  0x45   :  { %vm753_vm7 = vcmask 1047559  }
  0x47   :  { %269 = vadd.xlane.f32.xlu1 %v242_v17  ;;  %v2136_v17 = vld [vmem:[#allocation2 + $0xa0] sm:$0xff]  }
  0x48   :  { %401 = vadd.xlane.f32.xlu2 %v382_v14  ;;  %v529_v14 = vmul.f32 %v497_v8, %v461_v6  ;;  %v324_v21 = vunpack.c.l.bf16 %v2136_v17  ;;  %v539_v8 = vmul.f32 %v507_v63, %v471_v61  ;;  %v472_v29 = vunpack.c.h.bf16 %v2136_v17 }
  0x4a   :  { %253 = vadd.xlane.f32.xlu0 %v234_v19  ;;  %v196_v19 = vrot.slane %v2073_v9, 5  ;;  %v392_v24 = vmul.f32 %v360_v48, %v324_v21  ;;  %v354_v21 = vperm.slane %v339_v12, 0  ;;  %v178_v48 = vunpack.c.l.bf16 %v162_v15 }
  0x4c   :  { %v212_v23 = vperm.slane %v196_v19, 0 }
  0x4f   :  { %543 = vadd.xlane.f32.xlu1 %v527_v30  ;;  %v153_v30 = vld [vmem:[#allocation2 + $0x48] sm:$0xff]  }
  0x50   :  { %545 = vadd.xlane.f32.xlu2 %v528_v28  ;;  %v244_v28 = vmul.f32 %v212_v23, %v176_v1  ;;  %v169_v32 = vunpack.c.l.bf16 %v153_v30  ;;  %v317_v62 = vunpack.c.h.bf16 %v153_v30  ;;  %v508_v30 = vperm.slane %v492_v4, 0 }
  0x52   :  { %417 = vadd.xlane.f32.xlu0 %v390_v31  ;;  %v483_v31 = vrot.slane %v2109_v7, 3  ;;  %v237_v36 = vmul.f32 %v205_v33, %v169_v32  ;;  %v385_v53 = vmul.f32 %v353_v47, %v317_v62  ;;  %v540_v16 = vmul.f32 %v508_v30, %v472_v29 }
  0x54   :  { %v498_v35 = vperm.slane %v483_v31, 0  ;;  %v464_v31 = vunpack.c.l.bf16 %v448_v25 }
  0x57   :  { %561 = vadd.xlane.f32.xlu1 %v536_v41  ;;  %v2146_v41 = vld [vmem:[#allocation2 + $0xac] sm:$0xff]  }
  0x58   :  { %255 = vadd.xlane.f32.xlu2 %v235_v39  ;;  %v530_v39 = vmul.f32 %v498_v35, %v462_v34  ;;  %v325_v45 = vunpack.c.l.bf16 %v2146_v41  ;;  %v487_v35 = vrot.slane %v2109_v7, 7 }
  0x5a   :  { %559 = vadd.xlane.f32.xlu0 %v535_v42  ;;  %v197_v42 = vrot.slane %v2073_v9, 6  ;;  %v393_v51 = vmul.f32 %v361_v46, %v325_v45  ;;  %v502_v17 = vperm.slane %v487_v35, 0 }
  0x5c   :  { %v213_v50 = vperm.slane %v197_v42, 0  ;;  %v473_v42 = vunpack.c.h.bf16 %v2146_v41 }
  0x5f   :  { %403 = vadd.xlane.f32.xlu1 %v383_v56  ;;  %v154_v56 = vld [vmem:[#allocation2 + $0x54] sm:$0xff]  }
  0x60   :  { %419 = vadd.xlane.f32.xlu2 %v391_v54  ;;  %v245_v54 = vmul.f32 %v213_v50, %v177_v49  ;;  %v170_v59 = vunpack.c.l.bf16 %v154_v56  ;;  %v318_v44 = vunpack.c.h.bf16 %v154_v56  ;;  %v534_v50 = vmul.f32 %v502_v17, %v466_v40 }
  0x62   :  { %271 = vadd.xlane.f32.xlu0 %v243_v57  ;;  %v484_v57 = vrot.slane %v2109_v7, 4  ;;  %v238_v6 = vmul.f32 %v206_v60, %v170_v59  ;;  %v386_v1 = vmul.f32 %v354_v21, %v318_v44 }
  0x64   :  { %v499_v5 = vperm.slane %v484_v57, 0 }
  0x67   :  { %563 = vadd.xlane.f32.xlu1 %v537_v13  ;;  %v310_v13 = vld [vmem:[#allocation2 + $0xb8] sm:$0xff]  }
  0x68   :  { %257 = vadd.xlane.f32.xlu2 %v236_v10  ;;  %v531_v10 = vmul.f32 %v499_v5, %v463_v2  ;;  %v326_v19 = vunpack.c.l.bf16 %v310_v13 }
  0x6a   :  { %547 = vadd.xlane.f32.xlu0 %v529_v14  ;;  %v198_v14 = vrot.slane %v2073_v9, 7  ;;  %v394_v22 = vmul.f32 %v362_v20, %v326_v19  ;;  %v485_v9 = vrot.slane %v2109_v7, 5 }
  0x6c   :  { %v214_v3 = vperm.slane %v198_v14, 0  ;;  %v500_v32 = vperm.slane %v485_v9, 0 }
  0x6e   :  { %v246_v23 = vmul.f32 %v214_v3, %v178_v48  ;;  %v532_v34 = vmul.f32 %v500_v32, %v464_v31 }
  0x6f   :  { %405 = vadd.xlane.f32.xlu1 %v384_v26 }
  0x70   :  { %421 = vadd.xlane.f32.xlu2 %v392_v24  ;;  %v449_v24 = vld [vmem:[#allocation2 + $0x50] sm:$0xf] }
  0x71   :  { %v465_v26 = vunpack.c.l.bf16 %v449_v24 }
  0x72   :  { %273 = vadd.xlane.f32.xlu0 %v244_v28  ;;  %v501_v28 = vperm.slane %v486_v18, 0 }
  0x74   :  { %v533_v33 = vmul.f32 %v501_v28, %v465_v26 }
  0x77   :  { %565 = vadd.xlane.f32.xlu1 %v538_v38  ;;  %v474_v38 = vunpack.c.h.bf16 %v310_v13 }
  0x78   :  { %259 = vadd.xlane.f32.xlu2 %v237_v36  ;;  %v493_v36 = vrot.slane %v2117_v27, 6 }
  0x7a   :  { %549 = vadd.xlane.f32.xlu0 %v530_v39  ;;  %v510_v39 = vperm.slane %v494_v0, 0  ;;  %v509_v43 = vperm.slane %v493_v36, 0 }
  0x7c   :  { %v542_v47 = vmul.f32 %v510_v39, %v474_v38  ;;  %v541_v7 = vmul.f32 %v509_v43, %v473_v42 }
  0x7f   :  { %407 = vadd.xlane.f32.xlu1 %v385_v53 }
  0x80   :  { %423 = vadd.xlane.f32.xlu2 %v393_v51 }
  0x82   :  { %275 = vadd.xlane.f32.xlu0 %v245_v54 }
  0x87   :  { %567 = vadd.xlane.f32.xlu1 %v539_v8  ;;  %v2167_v8 = vld [vmem:[#allocation7] sm:$0xff] }
  0x88   :  { %261 = vadd.xlane.f32.xlu2 %v238_v6 }
  0x8a   :  { %551 = vadd.xlane.f32.xlu0 %v531_v10 }
  0x8f   :  { %409 = vadd.xlane.f32.xlu1 %v386_v1 }
  0x90   :  { %425 = vadd.xlane.f32.xlu2 %v394_v22 }
  0x92   :  { %277 = vadd.xlane.f32.xlu0 %v246_v23 }
  0x97   :  { %569 = vadd.xlane.f32.xlu1 %v540_v16 }
  0x98   :  { %555 = vadd.xlane.f32.xlu2 %v533_v33 }
  0x9a   :  { %553 = vadd.xlane.f32.xlu0 %v532_v34  ;;  %v264_v46 = vpop.xlane.xlu1 %263 }
  0x9b   :  { %v396_v45 = vpop.xlane.xlu2 %395 }
  0x9d   :  { %v248_v62 = vpop.xlane.xlu0 %247 }
  0x9e   :  { %v427_v49 = vadd.f32 %v396_v45, %v248_v62 }
  0x9f   :  { %557 = vadd.xlane.f32.xlu1 %v534_v50 }
  0xa0   :  { %573 = vadd.xlane.f32.xlu2 %v542_v47 }
  0xa2   :  { %571 = vadd.xlane.f32.xlu0 %v541_v7  ;;  %v266_v51 = vpop.xlane.xlu1 %265 }
  0xa3   :  { %v398_v27 = vpop.xlane.xlu2 %397 }
  0xa5   :  { %v412_v52 = vpop.xlane.xlu0 %411 }
  0xa6   :  { %v435_v53 = vadd.f32 %v412_v52, %v264_v46 }
  0xaa   :  { %v414_v55 = vpop.xlane.xlu1 %413 }
  0xab   :  { %v252_v54 = vpop.xlane.xlu2 %251  ;;  %v436_v57 = vadd.f32 %v414_v55, %v266_v51 }
  0xad   :  { %v250_v56 = vpop.xlane.xlu0 %249 }
  0xae   :  { %v428_v41 = vadd.f32 %v398_v27, %v250_v56 }
  0xb2   :  { %v400_v59 = vpop.xlane.xlu1 %399 }
  0xb3   :  { %v416_v58 = vpop.xlane.xlu2 %415  ;;  %v429_v61 = vadd.f32 %v400_v59, %v252_v54 }
  0xb5   :  { %v268_v60 = vpop.xlane.xlu0 %267 }
  0xb6   :  { %v437_v63 = vadd.f32 %v416_v58, %v268_v60 }
  0xba   :  { %v270_v5 = vpop.xlane.xlu1 %269 }
  0xbb   :  { %v402_v2 = vpop.xlane.xlu2 %401 }
  0xbd   :  { %v254_v6 = vpop.xlane.xlu0 %253 }
  0xbe   :  { %v2165_v11 = vadd.f32 %v402_v2, %v254_v6 }
  0xc2   :  { %v544_v12 = vpop.xlane.xlu1 %543 }
  0xc3   :  { %v546_v10 = vpop.xlane.xlu2 %545  ;;  %v575_v15 = vadd.f32 %v544_v12, %v427_v49 }
  0xc4   :  { %v576_v13 = vadd.f32 %v546_v10, %v428_v41 }
  0xc5   :  { %v418_v14 = vpop.xlane.xlu0 %417  ;;  %v593_v44 = vmul.f32 %v2167_v8, %v575_v15 }
  0xc6   :  { %v2169_v19 = vadd.f32 %v418_v14, %v270_v5  ;;  %v594_v20 = vmul.f32 %v2167_v8, %v576_v13 }
  0xc7   :  { %v610_v48 = vsel %vm609_vm0, %v593_v44, 0.0 }
  0xc8   :  { %v617_v21 = vsel %vm609_vm0, %v594_v20, 0.0  ;;  %v611_v22 = vrot.slane %v610_v48, 4 }
  0xc9   :  { %v618_v3 = vrot.slane %v617_v21, 4 }
  0xca   :  { %v612_v23 = vadd.f32 %v611_v22, %v610_v48  ;;  %v562_v4 = vpop.xlane.xlu1 %561 }
  0xcb   :  { %v619_v18 = vadd.f32 %v618_v3, %v617_v21  ;;  %v2175_v1 = vpop.xlane.xlu2 %255  ;;  %v584_v25 = vadd.f32 %v562_v4, %v436_v57 }
  0xcc   :  { %v613_v28 = vrot.slane %v612_v23, 2 }
  0xcd   :  { %v560_v24 = vpop.xlane.xlu0 %559  ;;  %v620_v9 = vrot.slane %v619_v18, 2  ;;  %v602_v30 = vmul.f32 %v2167_v8, %v584_v25 }
  0xce   :  { %v583_v26 = vadd.f32 %v560_v24, %v435_v53  ;;  %v614_v32 = vadd.f32 %v613_v28, %v612_v23 }
  0xcf   :  { %v621_v29 = vadd.f32 %v620_v9, %v619_v18  ;;  %v673_v0 = vsel %vm609_vm0, %v602_v30, 0.0 }
  0xd0   :  { %v601_v31 = vmul.f32 %v2167_v8, %v583_v26  ;;  %v615_v34 = vrot.slane %v614_v32, 1  ;;  %v674_v35 = vrot.slane %v673_v0, 4 }
  0xd1   :  { %v622_v33 = vrot.slane %v621_v29, 1 }
  0xd2   :  { %v666_v16 = vsel %vm609_vm0, %v601_v31, 0.0  ;;  %v616_v39 = vadd.f32 %v615_v34, %v614_v32  ;;  %v675_v40 = vadd.f32 %v674_v35, %v673_v0  ;;  %v404_v42 = vpop.xlane.xlu1 %403 }
  0xd3   :  { %v667_v36 = vrot.slane %v666_v16, 4  ;;  %v623_v37 = vadd.f32 %v622_v33, %v621_v29  ;;  %v2181_v38 = vpop.xlane.xlu2 %419 }
  0xd4   :  { %v676_v46 = vrot.slane %v675_v40, 2 }
  0xd5   :  { %v668_v17 = vadd.f32 %v667_v36, %v666_v16  ;;  %v2183_v43 = vpop.xlane.xlu0 %271  ;;  %v742_v45 = vsel %vm741_vm1, %v623_v37, %v616_v39 }
  0xd6   :  { %v677_v47 = vadd.f32 %v676_v46, %v675_v40 }
  0xd7   :  { %v669_v62 = vrot.slane %v668_v17, 2 }
  0xd8   :  { %v678_v50 = vrot.slane %v677_v47, 1 }
  0xd9   :  { %v670_v49 = vadd.f32 %v669_v62, %v668_v17  ;;  %v431_v17 = vadd.f32 %v404_v42, %v2175_v1 }
  0xda   :  { %v679_v51 = vadd.f32 %v678_v50, %v677_v47  ;;  %v564_v53 = vpop.xlane.xlu1 %563 }
  0xdb   :  { %v671_v7 = vrot.slane %v670_v49, 1  ;;  %v2186_v27 = vpop.xlane.xlu2 %257  ;;  %v585_v55 = vadd.f32 %v564_v53, %v437_v63 }
  0xdd   :  { %v672_v52 = vadd.f32 %v671_v7, %v670_v49  ;;  %v548_v54 = vpop.xlane.xlu0 %547  ;;  %v603_v41 = vmul.f32 %v2167_v8, %v585_v55 }
  0xde   :  { %v577_v56 = vadd.f32 %v548_v54, %v429_v61 }
  0xdf   :  { %v755_v57 = vsel %vm741_vm1, %v679_v51, %v672_v52  ;;  %v680_v59 = vsel %vm609_vm0, %v603_v41, 0.0  ;;  %v439_v52 = vadd.f32 %v2181_v38, %v2183_v43 }
  0xe0   :  { %v595_v58 = vmul.f32 %v2167_v8, %v577_v56  ;;  %v681_v2 = vrot.slane %v680_v59, 4 }
  0xe2   :  { %v624_v60 = vsel %vm609_vm0, %v595_v58, 0.0  ;;  %v682_v10 = vadd.f32 %v681_v2, %v680_v59  ;;  %v406_v13 = vpop.xlane.xlu1 %405 }
  0xe3   :  { %v625_v5 = vrot.slane %v624_v60, 4  ;;  %v2193_v6 = vpop.xlane.xlu2 %421  ;;  %v432_v38 = vadd.f32 %v406_v13, %v2186_v27 }
  0xe4   :  { %v683_v63 = vrot.slane %v682_v10, 2 }
  0xe5   :  { %v626_v12 = vadd.f32 %v625_v5, %v624_v60  ;;  %v274_v14 = vpop.xlane.xlu0 %273 }
  0xe6   :  { %v684_v15 = vadd.f32 %v683_v63, %v682_v10  ;;  %v440_v43 = vadd.f32 %v2193_v6, %v274_v14 }
  0xe7   :  { %v627_v61 = vrot.slane %v626_v12, 2 }
  0xe8   :  { %v685_v44 = vrot.slane %v684_v15, 1 }
  0xe9   :  { %v628_v20 = vadd.f32 %v627_v61, %v626_v12 }
  0xea   :  { %v686_v3 = vadd.f32 %v685_v44, %v684_v15  ;;  %v566_v18 = vpop.xlane.xlu1 %565 }
  0xeb   :  { %v629_v21 = vrot.slane %v628_v20, 1  ;;  %v260_v48 = vpop.xlane.xlu2 %259  ;;  %v586_v4 = vadd.f32 %v566_v18, %v2169_v19 }
  0xec   :  { %v756_v9 = vsel %vm743_vm2, %v686_v3, %v755_v57 }
  0xed   :  { %v630_v22 = vadd.f32 %v629_v21, %v628_v20  ;;  %v550_v23 = vpop.xlane.xlu0 %549  ;;  %v604_v26 = vmul.f32 %v2167_v8, %v586_v4 }
  0xee   :  { %v578_v24 = vadd.f32 %v550_v23, %v2165_v11 }
  0xef   :  { %v744_v25 = vsel %vm743_vm2, %v630_v22, %v742_v45  ;;  %v687_v29 = vsel %vm609_vm0, %v604_v26, 0.0 }
  0xf0   :  { %v596_v28 = vmul.f32 %v2167_v8, %v578_v24  ;;  %v688_v31 = vrot.slane %v687_v29, 4 }
  0xf2   :  { %v631_v30 = vsel %vm609_vm0, %v596_v28, 0.0  ;;  %v689_v0 = vadd.f32 %v688_v31, %v687_v29  ;;  %v408_v19 = vpop.xlane.xlu1 %407 }
  0xf3   :  { %v632_v32 = vrot.slane %v631_v30, 4  ;;  %v424_v33 = vpop.xlane.xlu2 %423  ;;  %v433_v5 = vadd.f32 %v408_v19, %v260_v48 }
  0xf4   :  { %v690_v11 = vrot.slane %v689_v0, 2 }
  0xf5   :  { %v633_v16 = vadd.f32 %v632_v32, %v631_v30  ;;  %v276_v34 = vpop.xlane.xlu0 %275 }
  0xf6   :  { %v691_v36 = vadd.f32 %v690_v11, %v689_v0  ;;  %v441_v26 = vadd.f32 %v424_v33, %v276_v34 }
  0xf7   :  { %v634_v35 = vrot.slane %v633_v16, 2 }
  0xf8   :  { %v692_v39 = vrot.slane %v691_v36, 1 }
  0xf9   :  { %v635_v37 = vadd.f32 %v634_v35, %v633_v16 }
  0xfa   :  { %v693_v46 = vadd.f32 %v692_v39, %v691_v36  ;;  %v568_v47 = vpop.xlane.xlu1 %567 }
  0xfb   :  { %v636_v40 = vrot.slane %v635_v37, 1  ;;  %v262_v45 = vpop.xlane.xlu2 %261  ;;  %v587_v54 = vadd.f32 %v568_v47, %v439_v52 }
  0xfc   :  { %v2206_v51 = vsel %vm745_vm3, %v693_v46, %v756_v9 }
  0xfd   :  { %v637_v62 = vadd.f32 %v636_v40, %v635_v37  ;;  %v552_v49 = vpop.xlane.xlu0 %551  ;;  %v605_v58 = vmul.f32 %v2167_v8, %v587_v54 }
  0xfe   :  { %v579_v50 = vadd.f32 %v552_v49, %v431_v17 }
  0xff   :  { %v746_v7 = vsel %vm745_vm3, %v637_v62, %v744_v25  ;;  %v694_v2 = vsel %vm609_vm0, %v605_v58, 0.0 }
 0x100   :  { %v597_v53 = vmul.f32 %v2167_v8, %v579_v50  ;;  %v695_v63 = vrot.slane %v694_v2, 4 }
 0x102   :  { %v638_v1 = vsel %vm609_vm0, %v597_v53, 0.0  ;;  %v410_v57 = vpop.xlane.xlu1 %409  ;;  %v696_v27 = vadd.f32 %v695_v63, %v694_v2 }
 0x103   :  { %v639_v42 = vrot.slane %v638_v1, 4  ;;  %v426_v55 = vpop.xlane.xlu2 %425  ;;  %v434_v28 = vadd.f32 %v410_v57, %v262_v45 }
 0x104   :  { %v697_v31 = vrot.slane %v696_v27, 2 }
 0x105   :  { %v640_v56 = vadd.f32 %v639_v42, %v638_v1  ;;  %v278_v41 = vpop.xlane.xlu0 %277 }
 0x106   :  { %v442_v24 = vadd.f32 %v426_v55, %v278_v41  ;;  %v698_v34 = vadd.f32 %v697_v31, %v696_v27 }
 0x107   :  { %v641_v59 = vrot.slane %v640_v56, 2 }
 0x108   :  { %v699_v55 = vrot.slane %v698_v34, 1 }
 0x109   :  { %v642_v60 = vadd.f32 %v641_v59, %v640_v56 }
 0x10a   :  { %v570_v15 = vpop.xlane.xlu1 %569 }
 0x10b   :  { %v643_v10 = vrot.slane %v642_v60, 1  ;;  %v556_v12 = vpop.xlane.xlu2 %555  ;;  %v588_v21 = vadd.f32 %v570_v15, %v440_v43 }
 0x10c   :  { %v581_v20 = vadd.f32 %v556_v12, %v433_v5 }
 0x10d   :  { %v644_v61 = vadd.f32 %v643_v10, %v642_v60  ;;  %v554_v44 = vpop.xlane.xlu0 %553  ;;  %v606_v48 = vmul.f32 %v2167_v8, %v588_v21  ;;  %v700_v10 = vadd.f32 %v699_v55, %v698_v34  ;;  %v1733_v21 = vld [vmem:[%s2322_s3] ss:$0 sm:$0xff] }
 0x10e   :  { %v580_v3 = vadd.f32 %v554_v44, %v432_v38  ;;  %v599_v22 = vmul.f32 %v2167_v8, %v581_v20 }
 0x10f   :  { %v748_v18 = vsel %vm747_vm4, %v644_v61, %v746_v7  ;;  %v701_v13 = vsel %vm609_vm0, %v606_v48, 0.0 }
 0x110   :  { %v598_v23 = vmul.f32 %v2167_v8, %v580_v3  ;;  %v652_v6 = vsel %vm609_vm0, %v599_v22, 0.0  ;;  %v702_v9 = vrot.slane %v701_v13, 4 }
 0x111   :  { %v653_v14 = vrot.slane %v652_v6, 4 }
 0x112   :  { %v645_v4 = vsel %vm609_vm0, %v598_v23, 0.0  ;;  %v703_v32 = vadd.f32 %v702_v9, %v701_v13  ;;  %v558_v16 = vpop.xlane.xlu1 %557  ;;  %v758_v23 = vsel %vm747_vm4, %v700_v10, %v2206_v51 }
 0x113   :  { %v646_v25 = vrot.slane %v645_v4, 4  ;;  %v654_v29 = vadd.f32 %v653_v14, %v652_v6  ;;  %v574_v30 = vpop.xlane.xlu2 %573  ;;  %v582_v36 = vadd.f32 %v558_v16, %v434_v28 }
 0x114   :  { %v590_v19 = vadd.f32 %v574_v30, %v442_v24  ;;  %v704_v39 = vrot.slane %v703_v32, 2 }
 0x115   :  { %v647_v0 = vadd.f32 %v646_v25, %v645_v4  ;;  %v572_v11 = vpop.xlane.xlu0 %571  ;;  %v655_v35 = vrot.slane %v654_v29, 2  ;;  %v600_v46 = vmul.f32 %v2167_v8, %v582_v36 }
 0x116   :  { %v589_v37 = vadd.f32 %v572_v11, %v441_v26  ;;  %v608_v17 = vmul.f32 %v2167_v8, %v590_v19  ;;  %v705_v49 = vadd.f32 %v704_v39, %v703_v32  ;;  %v815_v11 = vlaneseq }
 0x117   :  { %v648_v40 = vrot.slane %v647_v0, 2  ;;  %v656_v45 = vadd.f32 %v655_v35, %v654_v29  ;;  %v659_v50 = vsel %vm609_vm0, %v600_v46, 0.0 }
 0x118   :  { %v607_v33 = vmul.f32 %v2167_v8, %v589_v37  ;;  %v715_v47 = vsel %vm609_vm0, %v608_v17, 0.0  ;;  %v660_v54 = vrot.slane %v659_v50, 4  ;;  %v706_v41 = vrot.slane %v705_v49, 1 }
 0x119   :  { %v649_v62 = vadd.f32 %v648_v40, %v647_v0  ;;  %v716_v7 = vrot.slane %v715_v47, 4  ;;  %v657_v8 = vrot.slane %v656_v45, 1  ;;  %v816_v35 = vshrl.u32 %v815_v11, 7 }
 0x11a   :  { %v708_v52 = vsel %vm609_vm0, %v607_v33, 0.0  ;;  %v661_v56 = vadd.f32 %v660_v54, %v659_v50  ;;  %v707_v12 = vadd.f32 %v706_v41, %v705_v49 }
 0x11b   :  { %v650_v53 = vrot.slane %v649_v62, 1  ;;  %v709_v1 = vrot.slane %v708_v52, 4  ;;  %v717_v42 = vadd.f32 %v716_v7, %v715_v47  ;;  %v658_v63 = vadd.f32 %v657_v8, %v656_v45  ;;  %1731 = vset.pattern.permute.xlu2 %v816_v35  ;;  %1730 = vset.pattern.permute.xlu1 %v816_v35 }
 0x11c   :  { %v662_v60 = vrot.slane %v661_v56, 2  ;;  %v759_v6 = vsel %vm749_vm5, %v707_v12, %v758_v23  ;;  %1732 = vset.pattern.permute.xlu0 %v816_v35  ;;  %v1678_v23 = vld [vmem:[#allocation8] sm:$0xff]  }
 0x11d   :  { %v710_v57 = vadd.f32 %v709_v1, %v708_v52  ;;  %v718_v58 = vrot.slane %v717_v42, 2  ;;  %v651_v59 = vadd.f32 %v650_v53, %v649_v62 }
 0x11e   :  { %v663_v38 = vadd.f32 %v662_v60, %v661_v56 }
 0x11f   :  { %v711_v2 = vrot.slane %v710_v57, 2  ;;  %v719_v5 = vadd.f32 %v718_v58, %v717_v42  ;;  %v750_v44 = vsel %vm749_vm5, %v651_v59, %v748_v18 }
 0x120   :  { %v664_v15 = vrot.slane %v663_v38, 1  ;;  %v752_v27 = vsel %vm751_vm6, %v658_v63, %v750_v44 }
 0x121   :  { %v712_v43 = vadd.f32 %v711_v2, %v710_v57  ;;  %v720_v61 = vrot.slane %v719_v5, 1 }
 0x122   :  { %v665_v48 = vadd.f32 %v664_v15, %v663_v38 }
 0x123   :  { %v713_v20 = vrot.slane %v712_v43, 1  ;;  %v721_v3 = vadd.f32 %v720_v61, %v719_v5 }
 0x124   :  { %v754_v13 = vsel %vm753_vm7, %v665_v48, %v752_v27  ;;  %v1712_v48 = vld [vmem:[#allocation8 + $0x20] sm:$0xff]  }
 0x125   :  { %v714_v22 = vadd.f32 %v713_v20, %v712_v43  ;;  %v764_v14 = vsub.f32 %v1733_v21, %v754_v13  ;;  %v1696_v27 = vunpack.c.h.bf16 %v1712_v48  ;;  %v1680_v13 = vunpack.c.h.bf16 %v1678_v23 }
 0x127   :  { %v760_v18 = vsel %vm751_vm6, %v714_v22, %v759_v6  ;;  %v766_v9 = vsel %vm609_vm0, %v764_v14, -inf }
 0x128   :  { %v761_v4 = vsel %vm753_vm7, %v721_v3, %v760_v18  ;;  %767 = vmax.xlane.f32.xlu0 %v766_v9 }
 0x129   :  { %v765_v24 = vsub.f32 %v1733_v21, %v761_v4 }
 0x12b   :  { %v769_v25 = vsel %vm609_vm0, %v765_v24, -inf }
 0x12c   :  { %770 = vmax.xlane.f32.xlu1 %v769_v25 }
 0x19b   :  { %v768_v26 = vpop.xlane.xlu0 %767 }
 0x19c   :  { %v772_v51 = vsub.f32 %v764_v14, %v768_v26  ;;  %v1713_v14 = vld [vmem:[#allocation8 + $0x28] sm:$0xff]  }
 0x19d   :  { %v1699_v25 = vunpack.c.l.bf16 %v1713_v14 }
 0x19e   :  { %v774_v30 = vmul.f32 1.442695, %v772_v51 }
 0x19f   :  { %v771_v28 = vpop.xlane.xlu1 %770 }
 0x1a0   :  { %v773_v29 = vsub.f32 %v765_v24, %v771_v28  ;;  %1736 = vpow2.f32 %v774_v30 }
 0x1a2   :  { %v776_v31 = vmul.f32 1.442695, %v773_v29 }
 0x1a4   :  { %1738 = vpow2.f32 %v776_v31  ;;  %v1695_v31 = vunpack.c.l.bf16 %v1712_v48 }
 0x1a6   :  { %v1737_v32 = vpop.eup %1736 }
 0x1a7   :  { %v778_v16 = vsel %vm609_vm0, %v1737_v32, 0.0 }
 0x1a8   :  { %779 = vadd.xlane.f32.xlu2 %v778_v16 }
 0x1aa   :  { %v1739_v0 = vpop.eup %1738 }
 0x1ab   :  { %v781_v19 = vsel %vm609_vm0, %v1739_v0, 0.0  ;;  %vm974_vm0 = vcmask 326656  }
 0x1ac   :  { %782 = vadd.xlane.f32.xlu0 %v781_v19 }
 0x21b   :  { %v780_v36 = vpop.xlane.xlu2 %779 }
 0x21c   :  { %1740 = vrcp.f32 %v780_v36  ;;  %v795_v34 = vand.u32 2147483648, %v780_v36  ;;  %v793_v47 = vand.u32 2147483647, %v780_v36  ;;  %vm789_vm10 = vweird.f32 %v780_v36 }
 0x21e   :  { %v796_v53 = vor.u32 1.1754944e-38, %v795_v34  ;;  %vm794_vm13 = vcmp.eq.f32.partialorder %v793_v47, 8.507059e+37 }
 0x21f   :  { %v783_v37 = vpop.xlane.xlu0 %782 }
 0x220   :  { %1742 = vrcp.f32 %v783_v37  ;;  %v810_v49 = vand.u32 2147483648, %v783_v37  ;;  %v808_v7 = vand.u32 2147483647, %v783_v37  ;;  %vm804_vm12 = vweird.f32 %v783_v37 }
 0x222   :  { %v1741_v39 = vpop.eup %1740  ;;  %v811_v42 = vor.u32 1.1754944e-38, %v810_v49  ;;  %vm809_vm15 = vcmp.eq.f32.partialorder %v808_v7, 8.507059e+37 }
 0x223   :  { %v785_v17 = vmul.f32 %v1741_v39, %v780_v36  ;;  %vm790_vm8 = vweird.f32 %v1741_v39 }
 0x224   :  { %vm791_vm11 = vmor %vm789_vm10, %vm790_vm8  ;;  %vm1189_vm8 = vcmask 1043456  }
 0x225   :  { %v786_v33 = vsub.f32 1.0, %v785_v17 }
 0x226   :  { %v1743_v40 = vpop.eup %1742 }
 0x227   :  { %v800_v46 = vmul.f32 %v1743_v40, %v783_v37  ;;  %v787_v62 = vmul.f32 %v1741_v39, %v786_v33  ;;  %vm805_vm9 = vweird.f32 %v1743_v40  ;;  %v1700_v33 = vunpack.c.h.bf16 %v1713_v14 }
 0x228   :  { %vm806_vm14 = vmor %vm804_vm12, %vm805_vm9 }
 0x229   :  { %v801_v45 = vsub.f32 1.0, %v800_v46  ;;  %v788_v52 = vadd.f32 %v1741_v39, %v787_v62  ;;  %v1679_v46 = vunpack.c.l.bf16 %v1678_v23 }
 0x22b   :  { %v802_v50 = vmul.f32 %v1743_v40, %v801_v45  ;;  %v792_v1 = vsel %vm791_vm11, %v1741_v39, %v788_v52  ;;  %v1709_v39 = vld [vmem:[#allocation8 + $0x8] sm:$0xff]  }
 0x22c   :  { %v797_v55 = vsel %vm794_vm13, %v796_v53, %v792_v1  ;;  %v1683_v62 = vunpack.c.l.bf16 %v1709_v39 }
 0x22d   :  { %v803_v54 = vadd.f32 %v1743_v40, %v802_v50  ;;  %v798_v57 = vmul.f32 %v1737_v32, %v797_v55 }
 0x22f   :  { %v807_v56 = vsel %vm806_vm14, %v1743_v40, %v803_v54  ;;  %v821_v58 = vperm.slane %v798_v57, 1  ;;  %v814_v59 = vperm.slane %v798_v57, 0  ;;  %v828_v2 = vperm.slane %v798_v57, 2  ;;  %v2247_v40 = vld [vmem:[#allocation8 + $0x30] sm:$0xff]  }
 0x230   :  { %v812_v41 = vsel %vm809_vm15, %v811_v42, %v807_v56  ;;  %v835_v38 = vperm.slane %v798_v57, 3  ;;  %v856_v12 = vperm.slane %v798_v57, 6  ;;  %v842_v63 = vperm.slane %v798_v57, 4 }
 0x231   :  { %v813_v8 = vmul.f32 %v1739_v0, %v812_v41  ;;  %826 = vperm.xlu2 %1731, %v821_v58   ;;  %819 = vperm.xlu1 %1730, %v814_v59   ;;  %v849_v44 = vperm.slane %v798_v57, 5  ;;  %v863_v21 = vperm.slane %v798_v57, 7  ;;  %v1703_v47 = vunpack.c.l.bf16 %v2247_v40  ;;  %v1715_v59 = vld [vmem:[#allocation8 + $0x38] sm:$0xff]  }
 0x232   :  { %v1684_v58 = vunpack.c.h.bf16 %v1709_v39 }
 0x233   :  { %v870_v60 = vperm.slane %v813_v8, 0  ;;  %v877_v5 = vperm.slane %v813_v8, 1  ;;  %v898_v10 = vperm.slane %v813_v8, 4  ;;  %v884_v43 = vperm.slane %v813_v8, 2 }
 0x234   :  { %v891_v61 = vperm.slane %v813_v8, 3  ;;  %v919_v15 = vperm.slane %v813_v8, 7  ;;  %v905_v20 = vperm.slane %v813_v8, 5  ;;  %v912_v3 = vperm.slane %v813_v8, 6  ;;  %v1710_v8 = vld [vmem:[#allocation8 + $0x10] sm:$0xff]  }
 0x235   :  { %875 = vperm.xlu0 %1732, %v870_v60  }
 0x239   :  { %833 = vperm.xlu1 %1730, %v828_v2   ;;  %882 = vperm.xlu2 %1731, %v877_v5  }
 0x23d   :  { %903 = vperm.xlu0 %1732, %v898_v10  }
 0x241   :  { %840 = vperm.xlu1 %1730, %v835_v38   ;;  %889 = vperm.xlu2 %1731, %v884_v43   ;;  %v2253_v38 = vld [vmem:[#allocation8 + $0x18] sm:$0xff]  }
 0x242   :  { %v1691_v23 = vunpack.c.l.bf16 %v2253_v38 }
 0x245   :  { %861 = vperm.xlu0 %1732, %v856_v12  }
 0x249   :  { %847 = vperm.xlu1 %1730, %v842_v63   ;;  %896 = vperm.xlu2 %1731, %v891_v61   ;;  %v1688_v63 = vunpack.c.h.bf16 %v1710_v8 }
 0x24d   :  { %924 = vperm.xlu0 %1732, %v919_v15  }
 0x251   :  { %910 = vperm.xlu1 %1730, %v905_v20   ;;  %854 = vperm.xlu2 %1731, %v849_v44   ;;  %v1707_v44 = vunpack.c.l.bf16 %v1715_v59 }
 0x259   :  { %868 = vperm.xlu1 %1730, %v863_v21   ;;  %917 = vperm.xlu2 %1731, %v912_v3  }
 0x28b   :  { %v827_v22 = vpop.permute.xlu2 %826 }
 0x28c   :  { %v959_v4 = vmul.f32 %v1680_v13, %v827_v22 }
 0x28e   :  { %v982_v26 = vsel %vm974_vm0, %v959_v4, 0.0 }
 0x28f   :  { %v983_v29 = vrot.slane %v982_v26, 4 }
 0x291   :  { %v984_v11 = vadd.f32 %v983_v29, %v982_v26 }
 0x293   :  { %v883_v6 = vpop.permute.xlu2 %882  ;;  %v985_v17 = vrot.slane %v984_v11, 2 }
 0x294   :  { %v967_v18 = vmul.f32 %v1696_v27, %v883_v6 }
 0x295   :  { %v986_v53 = vadd.f32 %v985_v17, %v984_v11 }
 0x296   :  { %v1038_v24 = vsel %vm974_vm0, %v967_v18, 0.0 }
 0x297   :  { %v1039_v51 = vrot.slane %v1038_v24, 4  ;;  %v987_v60 = vrot.slane %v986_v53, 1 }
 0x299   :  { %v1040_v30 = vadd.f32 %v1039_v51, %v1038_v24  ;;  %v2258_v6 = vadd.f32 %v987_v60, %v986_v53 }
 0x29b   :  { %v890_v9 = vpop.permute.xlu2 %889  ;;  %v1041_v35 = vrot.slane %v1040_v30, 2 }
 0x29c   :  { %v968_v28 = vmul.f32 %v1699_v25, %v890_v9 }
 0x29d   :  { %v1042_v34 = vadd.f32 %v1041_v35, %v1040_v30 }
 0x29e   :  { %v1045_v16 = vsel %vm974_vm0, %v968_v28, 0.0  ;;  %v2261_v28 = vld [vmem:[#allocation10 + $0x20] sm:$0xff] }
 0x29f   :  { %v1046_v37 = vrot.slane %v1045_v16, 4  ;;  %v1043_v55 = vrot.slane %v1042_v34, 1  ;;  %v1174_v39 = vunpack.c.l.b16 %v2261_v28 }
 0x2a1   :  { %v1047_v49 = vadd.f32 %v1046_v37, %v1045_v16  ;;  %v1044_v43 = vadd.f32 %v1043_v55, %v1042_v34  ;;  %v1708_v37 = vunpack.c.h.bf16 %v1715_v59 }
 0x2a3   :  { %v820_v32 = vpop.permute.xlu1 %819  ;;  %v897_v0 = vpop.permute.xlu2 %896  ;;  %v1048_v41 = vrot.slane %v1047_v49, 2  ;;  %v1096_v4 = vpack.c.bf16 %v1044_v43, %v1044_v43 }
 0x2a4   :  { %v958_v54 = vmul.f32 %v1679_v46, %v820_v32  ;;  %v969_v1 = vmul.f32 %v1700_v33, %v897_v0  ;;  %v1687_v32 = vunpack.c.l.bf16 %v1710_v8  ;;  %v1088_v0 = vpack.c.bf16 %v2258_v6, %v2258_v6 }
 0x2a5   :  { %v1049_v15 = vadd.f32 %v1048_v41, %v1047_v49  ;;  %v2265_v35 = vunpack.c.l.b16 %v1096_v4  ;;  %v1531_v4 = vld [vmem:[#allocation10] sm:$0xf] }
 0x2a6   :  { %v975_v2 = vsel %vm974_vm0, %v958_v54, 0.0  ;;  %v1052_v5 = vsel %vm974_vm0, %v969_v1, 0.0 }
 0x2a7   :  { %v876_v19 = vpop.permute.xlu0 %875  ;;  %v976_v21 = vrot.slane %v975_v2, 4  ;;  %v1053_v3 = vrot.slane %v1052_v5, 4  ;;  %v1050_v25 = vrot.slane %v1049_v15, 1 }
 0x2a8   :  { %v966_v36 = vmul.f32 %v1695_v31, %v876_v19 }
 0x2a9   :  { %v977_v29 = vadd.f32 %v976_v21, %v975_v2  ;;  %v1054_v30 = vadd.f32 %v1053_v3, %v1052_v5  ;;  %v2269_v17 = vadd.f32 %v1050_v25, %v1049_v15  ;;  %v1539_v5 = vld [vmem:[#allocation10 + $0x10] sm:$0xf] }
 0x2aa   :  { %v1031_v45 = vsel %vm974_vm0, %v966_v36, 0.0 }
 0x2ab   :  { %v834_v50 = vpop.permute.xlu1 %833  ;;  %v855_v7 = vpop.permute.xlu2 %854  ;;  %v1032_v42 = vrot.slane %v1031_v45, 4  ;;  %v1097_v41 = vpack.c.bf16 %v2269_v17, %v2269_v17 }
 0x2ac   :  { %v960_v56 = vmul.f32 %v1683_v62, %v834_v50  ;;  %v963_v24 = vmul.f32 %v1688_v63, %v855_v7  ;;  %v978_v62 = vrot.slane %v977_v29, 2 }
 0x2ad   :  { %v1033_v10 = vadd.f32 %v1032_v42, %v1031_v45  ;;  %v1704_v45 = vunpack.c.h.bf16 %v2247_v40 }
 0x2ae   :  { %v989_v12 = vsel %vm974_vm0, %v960_v56, 0.0  ;;  %v1010_v36 = vsel %vm974_vm0, %v963_v24, 0.0  ;;  %v979_v59 = vadd.f32 %v978_v62, %v977_v29  ;;  %v1650_v24 = vld [vmem:[#allocation10 + $0x4] sm:$0xf0] }
 0x2af   :  { %v904_v52 = vpop.permute.xlu0 %903  ;;  %v1034_v13 = vrot.slane %v1033_v10, 2  ;;  %v990_v18 = vrot.slane %v989_v12, 4  ;;  %v1011_v54 = vrot.slane %v1010_v36, 4 }
 0x2b0   :  { %v970_v57 = vmul.f32 %v1703_v47, %v904_v52  ;;  %v1055_v47 = vrot.slane %v1054_v30, 2 }
 0x2b1   :  { %v1035_v16 = vadd.f32 %v1034_v13, %v1033_v10  ;;  %v991_v19 = vadd.f32 %v990_v18, %v989_v12  ;;  %v1652_v10 = vld [vmem:[#allocation10 + $0x14] sm:$0xf0]  ;;  %v1012_v12 = vadd.f32 %v1011_v54, %v1010_v36  ;;  %v980_v13 = vrot.slane %v979_v59, 1 }
 0x2b2   :  { %v1059_v61 = vsel %vm974_vm0, %v970_v57, 0.0  ;;  %v1180_v57 = vpack.c.b16 %v1174_v39, %v1174_v39  ;;  %v1056_v60 = vadd.f32 %v1055_v47, %v1054_v30  ;;  %v1651_v47 = vld [vmem:[#allocation10 + $0x14] sm:$0xf] }
 0x2b3   :  { %v841_v20 = vpop.permute.xlu1 %840  ;;  %v918_v48 = vpop.permute.xlu2 %917  ;;  %v1060_v14 = vrot.slane %v1059_v61, 4  ;;  %v1036_v52 = vrot.slane %v1035_v16, 1  ;;  %v992_v53 = vrot.slane %v991_v19, 2  ;;  %v981_v39 = vadd.f32 %v980_v13, %v979_v59 }
 0x2b4   :  { %v961_v22 = vmul.f32 %v1684_v58, %v841_v20  ;;  %v972_v51 = vmul.f32 %v1707_v44, %v918_v48  ;;  %v1191_v21 = vsel %vm1189_vm8, %v1180_v57, 0  ;;  %v1057_v18 = vrot.slane %v1056_v60, 1 }
 0x2b5   :  { %v1061_v11 = vadd.f32 %v1060_v14, %v1059_v61  ;;  %v1037_v43 = vadd.f32 %v1036_v52, %v1035_v16  ;;  %v993_v15 = vadd.f32 %v992_v53, %v991_v19  ;;  %1201 = vmatpush.bf16.msra.mxu1 %v1191_v21 }
 0x2b6   :  { %v996_v9 = vsel %vm974_vm0, %v961_v22, 0.0  ;;  %v1073_v33 = vsel %vm974_vm0, %v972_v51, 0.0 }
 0x2b7   :  { %v862_v27 = vpop.permute.xlu0 %861  ;;  %v997_v26 = vrot.slane %v996_v9, 4  ;;  %v1062_v1 = vrot.slane %v1061_v11, 2  ;;  %v1074_v42 = vrot.slane %v1073_v33, 4  ;;  %v1095_v25 = vpack.c.bf16 %v1037_v43, %v1037_v43 }
 0x2b8   :  { %v964_v31 = vmul.f32 %v1691_v23, %v862_v27  ;;  %v1540_v27 = vor.u32 %v1652_v10, %v1539_v5  ;;  %v994_v30 = vrot.slane %v993_v15, 1  ;;  %v1649_v5 = vld [vmem:[#allocation10 + $0x4] sm:$0xf] }
 0x2b9   :  { %v998_v46 = vadd.f32 %v997_v26, %v996_v9  ;;  %v1063_v20 = vadd.f32 %v1062_v1, %v1061_v11  ;;  %v1075_v44 = vadd.f32 %v1074_v42, %v1073_v33  ;;  %v1175_v9 = vunpack.c.h.b16 %v2261_v28 }
 0x2ba   :  { %v1017_v49 = vsel %vm974_vm0, %v964_v31, 0.0  ;;  %v1013_v26 = vrot.slane %v1012_v12, 2  ;;  %1202 = vmatpush.bf16.msra.mxu1 %v1540_v27  ;;  %v1692_v33 = vunpack.c.h.bf16 %v2253_v38  ;;  %v1058_v28 = vadd.f32 %v1057_v18, %v1056_v60 }
 0x2bb   :  { %v848_v34 = vpop.permute.xlu1 %847  ;;  %v999_v8 = vrot.slane %v998_v46, 2  ;;  %v1018_v40 = vrot.slane %v1017_v49, 4  ;;  %v1076_v31 = vrot.slane %v1075_v44, 2  ;;  %v1181_v16 = vpack.c.b16 %v1175_v9, %v1175_v9 }
 0x2bc   :  { %v962_v50 = vmul.f32 %v1687_v32, %v848_v34  ;;  %v1064_v19 = vrot.slane %v1063_v20, 1  ;;  %v1014_v34 = vadd.f32 %v1013_v26, %v1012_v12  ;;  %v1138_v54 = vunpack.c.l.b16 %v1095_v25 }
 0x2bd   :  { %v1000_v3 = vadd.f32 %v999_v8, %v998_v46  ;;  %v1019_v22 = vadd.f32 %v1018_v40, %v1017_v49  ;;  %v1194_v62 = vsel %vm1189_vm8, %v1181_v16, 0  ;;  %v1541_v49 = vld [vmem:[#allocation10 + $0x18] sm:$0xf0]  ;;  %v1077_v52 = vadd.f32 %v1076_v31, %v1075_v44 }
 0x2be   :  { %v1003_v55 = vsel %vm974_vm0, %v962_v50, 0.0  ;;  %v1140_v50 = vunpack.c.l.b16 %v1097_v41  ;;  %v1065_v1 = vadd.f32 %v1064_v19, %v1063_v20  ;;  %v1544_v40 = vor.u32 %v1651_v47, %v1541_v49  ;;  %v1533_v41 = vld [vmem:[#allocation10 + $0x8] sm:$0xf0] }
 0x2bf   :  { %v925_v7 = vpop.permute.xlu0 %924  ;;  %v1004_v58 = vrot.slane %v1003_v55, 4  ;;  %v1001_v11 = vrot.slane %v1000_v3, 1  ;;  %v1020_v36 = vrot.slane %v1019_v22, 2  ;;  %v1098_v59 = vpack.c.bf16 %v1058_v28, %v1058_v28 }
 0x2c0   :  { %v973_v56 = vmul.f32 %v1708_v37, %v925_v7  ;;  %v1532_v37 = vor.u32 %v1650_v24, %v1531_v4  ;;  %v995_v7 = vadd.f32 %v994_v30, %v993_v15  ;;  %v1015_v60 = vrot.slane %v1014_v34, 1 }
 0x2c1   :  { %v1005_v63 = vadd.f32 %v1004_v58, %v1003_v55  ;;  %v1002_v42 = vadd.f32 %v1001_v11, %v1000_v3  ;;  %v1021_v55 = vadd.f32 %v1020_v36, %v1019_v22  ;;  %v1087_v58 = vpack.c.bf16 %v981_v39, %v981_v39 }
 0x2c2   :  { %v1080_v2 = vsel %vm974_vm0, %v973_v56, 0.0  ;;  %1203 = vmatpush.bf16.msra.mxu1 %v1532_v37  ;;  %v1089_v10 = vpack.c.bf16 %v995_v7, %v995_v7  ;;  %v1078_v43 = vrot.slane %v1077_v52, 1  ;;  %v1099_v15 = vpack.c.bf16 %v1065_v1, %v1065_v1 }
 0x2c3   :  { %v1081_v61 = vrot.slane %v1080_v2, 4  ;;  %v1006_v48 = vrot.slane %v1005_v63, 2  ;;  %v911_v23 = vpop.permute.xlu1 %910  ;;  %v1090_v20 = vpack.c.bf16 %v1002_v42, %v1002_v42  ;;  %v1022_v21 = vrot.slane %v1021_v55, 1 }
 0x2c4   :  { %v971_v14 = vmul.f32 %v1704_v45, %v911_v23  ;;  %v1130_v23 = vunpack.c.l.b16 %v1087_v58  ;;  %v1016_v27 = vadd.f32 %v1015_v60, %v1014_v34  ;;  %v1132_v4 = vunpack.c.l.b16 %v1089_v10  ;;  %v1658_v58 = vld [vmem:[#allocation11 + $0x28] sm:$0xff]  ;;  %v1668_v60 = vld [vmem:[#allocation11 + $0x78] sm:$0xff] }
 0x2c5   :  { %v1007_v51 = vadd.f32 %v1006_v48, %v1005_v63  ;;  %v1082_v29 = vadd.f32 %v1081_v61, %v1080_v2  ;;  %v1153_v61 = vsel %vm741_vm1, %v2265_v35, %v1138_v54  ;;  %v1536_v48 = vor.u32 %v1649_v5, %v1533_v41  ;;  %v1660_v35 = vld [vmem:[#allocation11 + $0x38] sm:$0xff]  ;;  %1396 = vmatpush.bf16.msra.mxu3 %v1668_v60  ;;  %v1655_v5 = vld [vmem:[#allocation11 + $0x10] sm:$0xff]  ;;  %v1654_v10 = vld [vmem:[#allocation11 + $0x8] sm:$0xff] }
 0x2c6   :  { %v1066_v32 = vsel %vm974_vm0, %v971_v14, 0.0  ;;  %1215 = vmatpush.bf16.msrb.mxu1 %v1194_v62  ;;  %v1131_v14 = vunpack.c.l.b16 %v1088_v0  ;;  %v1079_v24 = vadd.f32 %v1078_v43, %v1077_v52  ;;  %v1141_v25 = vunpack.c.l.b16 %v1098_v59  ;;  %1382 = vmatpush.bf16.msra.mxu2 %v1660_v35  ;;  %v1657_v59 = vld [vmem:[#allocation11 + $0x20] sm:$0xff]  ;;  %v1667_v41 = vld [vmem:[#allocation11 + $0x70] sm:$0xff]  ;;  %v1666_v43 = vld [vmem:[#allocation11 + $0x68] sm:$0xff] }
 0x2c7   :  { %v1008_v17 = vrot.slane %v1007_v51, 1  ;;  %v1067_v46 = vrot.slane %v1066_v32, 4  ;;  %v1083_v45 = vrot.slane %v1082_v29, 2  ;;  %v1154_v26 = vsel %vm743_vm2, %v1140_v50, %v1153_v61  ;;  %v1653_v61 = vld [vmem:[#allocation11] sm:$0xff] }
 0x2c8   :  { %v1142_v30 = vunpack.c.l.b16 %v1099_v15  ;;  %v1023_v31 = vadd.f32 %v1022_v21, %v1021_v55  ;;  %v1146_v19 = vsel %vm741_vm1, %v1131_v14, %v1130_v23  ;;  %v1092_v11 = vpack.c.bf16 %v1016_v27, %v1016_v27  ;;  %v1665_v15 = vld [vmem:[#allocation11 + $0x60] sm:$0xff]  ;;  %v1664_v21 = vld [vmem:[#allocation11 + $0x58] sm:$0xff] }
 0x2c9   :  { %v1068_v53 = vadd.f32 %v1067_v46, %v1066_v32  ;;  %v1009_v57 = vadd.f32 %v1008_v17, %v1007_v51  ;;  %v1084_v2 = vadd.f32 %v1083_v45, %v1082_v29  ;;  %v1133_v51 = vunpack.c.l.b16 %v1090_v20  ;;  %1397 = vmatpush.bf16.msra.mxu3 %v1667_v41 }
 0x2ca   :  { %1216 = vmatpush.bf16.msrb.mxu1 %v1544_v40  ;;  %v1147_v36 = vsel %vm743_vm2, %v1132_v4, %v1146_v19  ;;  %v1101_v37 = vpack.c.bf16 %v1079_v24, %v1079_v24  ;;  %v1093_v28 = vpack.c.bf16 %v1023_v31, %v1023_v31  ;;  %v1135_v62 = vunpack.c.l.b16 %v1092_v11  ;;  %v1659_v40 = vld [vmem:[#allocation11 + $0x30] sm:$0xff]  ;;  %v1661_v24 = vld [vmem:[#allocation11 + $0x40] sm:$0xff] }
 0x2cb   :  { %v869_v56 = vpop.permute.xlu1 %868  ;;  %v1069_v8 = vrot.slane %v1068_v53, 2  ;;  %v1091_v3 = vpack.c.bf16 %v1009_v57, %v1009_v57  ;;  %v1085_v13 = vrot.slane %v1084_v2, 1  ;;  %v1148_v17 = vsel %vm745_vm3, %v1133_v51, %v1147_v36  ;;  %1383 = vmatpush.bf16.msra.mxu2 %v1659_v40 }
 0x2cc   :  { %v965_v38 = vmul.f32 %v1692_v33, %v869_v56  ;;  %v1155_v33 = vsel %vm745_vm3, %v1141_v25, %v1154_v26  ;;  %v1144_v7 = vunpack.c.l.b16 %v1101_v37  ;;  %v1136_v54 = vunpack.c.l.b16 %v1093_v28 }
 0x2cd   :  { %v1070_v12 = vadd.f32 %v1069_v8, %v1068_v53  ;;  %v1134_v32 = vunpack.c.l.b16 %v1091_v3  ;;  %v1086_v6 = vadd.f32 %v1085_v13, %v1084_v2  ;;  %v1156_v45 = vsel %vm747_vm4, %v1142_v30, %v1155_v33  ;;  %v1656_v2 = vld [vmem:[#allocation11 + $0x18] sm:$0xff]  ;;  %1398 = vmatpush.bf16.msra.mxu3 %v1666_v43  ;;  %v1662_v13 = vld [vmem:[#allocation11 + $0x48] sm:$0xff] }
 0x2ce   :  { %v1024_v63 = vsel %vm974_vm0, %v965_v38, 0.0  ;;  %1217 = vmatpush.bf16.msrb.mxu1 %v1536_v48 }
 0x2cf   :  { %v1025_v44 = vrot.slane %v1024_v63, 4  ;;  %v1071_v22 = vrot.slane %v1070_v12, 1  ;;  %v1149_v34 = vsel %vm747_vm4, %v1134_v32, %v1148_v17  ;;  %v1102_v47 = vpack.c.bf16 %v1086_v6, %v1086_v6  ;;  %1384 = vmatpush.bf16.msra.mxu2 %v1658_v58 }
 0x2d0   :  { %v1150_v53 = vsel %vm749_vm5, %v1135_v62, %v1149_v34  ;;  %v1675_v62 = vld [vmem:[#allocation13 + $0x30] sm:$0xff] }
 0x2d1   :  { %v1026_v18 = vadd.f32 %v1025_v44, %v1024_v63  ;;  %v1072_v9 = vadd.f32 %v1071_v22, %v1070_v12  ;;  %v1145_v42 = vunpack.c.l.b16 %v1102_v47  ;;  %v1151_v56 = vsel %vm751_vm6, %v1136_v54, %v1150_v53  ;;  %v1108_v12 = vld [vmem:[%s2325_s6] sm:$0x3]  ;;  %1399 = vmatpush.bf16.msra.mxu3 %v1665_v15  ;;  %v1663_v22 = vld [vmem:[#allocation11 + $0x50] sm:$0xff]  ;;  %v1674_v47 = vld [vmem:[#allocation13 + $0x28] sm:$0xff] }
 0x2d2   :  { %v1110_v63 = vperm.slane %v1108_v12, 0  ;;  %v1111_v4 = vperm.slane %v1108_v12, 1  ;;  %v1734_v54 = vld [vmem:[%s2327_s8] ss:$0 sm:$0xff] }
 0x2d3   :  { %v1027_v29 = vrot.slane %v1026_v18, 2  ;;  %v1100_v16 = vpack.c.bf16 %v1072_v9, %v1072_v9  ;;  %1385 = vmatpush.bf16.msra.mxu2 %v1657_v59  ;;  %v1735_v15 = vld [vmem:[%s2329_s10] ss:$0 sm:$0xff] }
 0x2d5   :  { %v1028_v0 = vadd.f32 %v1027_v29, %v1026_v18  ;;  %v1143_v39 = vunpack.c.l.b16 %v1100_v16  ;;  %1400 = vmatpush.bf16.msra.mxu3 %v1664_v21 }
 0x2d7   :  { %v1029_v46 = vrot.slane %v1028_v0, 1  ;;  %v1157_v50 = vsel %vm749_vm5, %v1143_v39, %v1156_v45  ;;  %1386 = vmatpush.bf16.msra.mxu2 %v1656_v2  ;;  %v1676_v45 = vld [vmem:[#allocation13 + $0x38] sm:$0xff] }
 0x2d8   :  { %v1158_v1 = vsel %vm751_vm6, %v1144_v7, %v1157_v50  ;;  %1491 = vmatpush.bf16.msra.mxu0 %v1676_v45  ;;  %v1672_v50 = vld [vmem:[#allocation13 + $0x18] sm:$0xff]  ;;  %v1671_v7 = vld [vmem:[#allocation13 + $0x10] sm:$0xff] }
 0x2d9   :  { %v1030_v49 = vadd.f32 %v1029_v46, %v1028_v0  ;;  %v1159_v8 = vsel %vm753_vm7, %v1145_v42, %v1158_v1  ;;  %1401 = vmatpush.bf16.msra.mxu3 %v1663_v22  ;;  %v1669_v1 = vld [vmem:[#allocation13] sm:$0xff] }
 0x2db   :  { %v1094_v52 = vpack.c.bf16 %v1030_v49, %v1030_v49  ;;  %1387 = vmatpush.bf16.msra.mxu2 %v1655_v5  ;;  %v1673_v49 = vld [vmem:[#allocation13 + $0x20] sm:$0xff] }
 0x2dc   :  { %1492 = vmatpush.bf16.msra.mxu0 %v1675_v62 }
 0x2dd   :  { %v1137_v55 = vunpack.c.l.b16 %v1094_v52  ;;  %1402 = vmatpush.bf16.msra.mxu3 %v1662_v13  ;;  %v1670_v52 = vld [vmem:[#allocation13 + $0x8] sm:$0xff] }
 0x2df   :  { %v1152_v57 = vsel %vm753_vm7, %v1137_v55, %v1151_v56  ;;  %1388 = vmatpush.bf16.msra.mxu2 %v1654_v10 }
 0x2e0   :  { %v1160_v38 = vpack.c.b16 %v1159_v8, %v1152_v57  ;;  %1493 = vmatpush.bf16.msra.mxu0 %v1674_v47 }
 0x2e1   :  { %1403 = vmatpush.bf16.msra.mxu3 %v1661_v24 }
 0x2e2   :  { %1545 = vmatmul.msk.bf16.vlgmr.msra.gmra.mxu1 %vm974_vm0, %v1160_v38 }
 0x2e3   :  { %1389 = vmatpush.bf16.msra.mxu2 %v1653_v61 }
 0x2e4   :  { %1494 = vmatpush.bf16.msra.mxu0 %v1673_v49 }
 0x2e8   :  { %1495 = vmatpush.bf16.msra.mxu0 %v1672_v50 }
 0x2ec   :  { %1496 = vmatpush.bf16.msra.mxu0 %v1671_v7 }
 0x2f0   :  { %1497 = vmatpush.bf16.msra.mxu0 %v1670_v52 }
 0x2f2   :  { %1546 = vmatmul.msk.bf16.vlgmr.msrb.gmra.mxu1 %vm974_vm0, %v1160_v38 }
 0x2f4   :  { %1498 = vmatpush.bf16.msra.mxu0 %v1669_v1 }
 0x35f   :  { %v1205_v20 = vpop.f32.mrf.mxu1 }
 0x360   :  { %v1206_v44 = vadd.f32 %v1205_v20, %v1110_v63 }
 0x362   :  { %v1228_v3 = vmin.f32 %v1206_v44, 0.0  ;;  %vm1224_vm1 = vcmp.gt.f32.partialorder %v1206_v44, 0.0 }
 0x364   :  { %v1232_v48 = vmul.f32 1.442695, %v1228_v3 }
 0x366   :  { %1744 = vpow2.f32 %v1232_v48 }
 0x367   :  { %v1207_v23 = vpop.f32.mrf.mxu1 }
 0x368   :  { %v1208_v27 = vadd.f32 %v1207_v23, %v1110_v63 }
 0x36a   :  { %v1230_v18 = vmin.f32 %v1208_v27, 0.0  ;;  %vm1226_vm2 = vcmp.gt.f32.partialorder %v1208_v27, 0.0 }
 0x36c   :  { %v1236_v14 = vmul.f32 1.442695, %v1230_v18  ;;  %v1745_v35 = vpop.eup %1744 }
 0x36d   :  { %v1547_v51 = vadd.f32 -1.0, %v1745_v35 }
 0x36e   :  { %1746 = vpow2.f32 %v1236_v14 }
 0x36f   :  { %v1219_v9 = vpop.f32.mrf.mxu1  ;;  %v1244_v16 = vsel %vm1224_vm1, %v1206_v44, %v1547_v51 }
 0x370   :  { %v1220_v25 = vadd.f32 %v1219_v9, %v1111_v4 }
 0x372   :  { %v1229_v26 = vmin.f32 %v1220_v25, 0.0  ;;  %vm1225_vm3 = vcmp.gt.f32.partialorder %v1220_v25, 0.0 }
 0x374   :  { %v1747_v29 = vpop.eup %1746  ;;  %v1234_v31 = vmul.f32 1.442695, %v1229_v26 }
 0x375   :  { %v1549_v30 = vadd.f32 -1.0, %v1747_v29 }
 0x376   :  { %1748 = vpow2.f32 %v1234_v31 }
 0x377   :  { %v1221_v32 = vpop.f32.mrf.mxu1  ;;  %v1246_v19 = vsel %vm1226_vm2, %v1208_v27, %v1549_v30 }
 0x378   :  { %v1222_v11 = vadd.f32 %v1221_v32, %v1111_v4  ;;  %v1248_v6 = vpack.c.bf16 %v1246_v19, %v1244_v16 }
 0x37a   :  { %v1231_v0 = vmin.f32 %v1222_v11, 0.0  ;;  %1390 = vmatmul.bf16.vlgmr.msra.gmra.mxu2 %v1248_v6  ;;  %vm1227_vm4 = vcmp.gt.f32.partialorder %v1222_v11, 0.0 }
 0x37c   :  { %v1238_v36 = vmul.f32 1.442695, %v1231_v0  ;;  %v1749_v37 = vpop.eup %1748 }
 0x37d   :  { %v1548_v39 = vadd.f32 -1.0, %v1749_v37 }
 0x37e   :  { %1750 = vpow2.f32 %v1238_v36 }
 0x37f   :  { %v1245_v33 = vsel %vm1225_vm3, %v1220_v25, %v1548_v39 }
 0x384   :  { %v1751_v17 = vpop.eup %1750 }
 0x385   :  { %v1550_v46 = vadd.f32 -1.0, %v1751_v17 }
 0x387   :  { %v1247_v28 = vsel %vm1227_vm4, %v1222_v11, %v1550_v46 }
 0x388   :  { %v1249_v34 = vpack.c.bf16 %v1247_v28, %v1245_v33 }
 0x38a   :  { %1404 = vmatmul.bf16.vlgmr.msra.gmra.mxu3 %v1249_v34 }
 0x3fd   :  { %v1391_v53 = vpop.f32.mrf.mxu2 }
 0x3fe   :  { %v1392_v42 = vadd.f32 %v1734_v54, %v1391_v53 }
 0x405   :  { %v1393_v8 = vpop.f32.mrf.mxu2 }
 0x406   :  { %v1394_v38 = vadd.f32 %v1734_v54, %v1393_v8 }
 0x40d   :  { %v1405_v55 = vpop.f32.mrf.mxu3 }
 0x40e   :  { %v1406_v56 = vadd.f32 %v1405_v55, %v1392_v42 }
 0x410   :  { %v1412_v57 = vmin.f32 %v1406_v56, 0.0  ;;  %vm1410_vm5 = vcmp.gt.f32.partialorder %v1406_v56, 0.0 }
 0x412   :  { %v1414_v40 = vmul.f32 1.442695, %v1412_v57 }
 0x414   :  { %1752 = vpow2.f32 %v1414_v40 }
 0x415   :  { %v1407_v58 = vpop.f32.mrf.mxu3 }
 0x416   :  { %v1408_v59 = vadd.f32 %v1407_v58, %v1394_v38 }
 0x418   :  { %v1413_v60 = vmin.f32 %v1408_v59, 0.0  ;;  %vm1411_vm6 = vcmp.gt.f32.partialorder %v1408_v59, 0.0 }
 0x41a   :  { %v1416_v2 = vmul.f32 1.442695, %v1413_v60  ;;  %v1753_v5 = vpop.eup %1752 }
 0x41b   :  { %v1615_v41 = vadd.f32 -1.0, %v1753_v5 }
 0x41c   :  { %1754 = vpow2.f32 %v1416_v2 }
 0x41d   :  { %v1420_v12 = vsel %vm1410_vm5, %v1406_v56, %v1615_v41 }
 0x422   :  { %v1755_v10 = vpop.eup %1754 }
 0x423   :  { %v1616_v43 = vadd.f32 -1.0, %v1755_v10 }
 0x425   :  { %v1421_v63 = vsel %vm1411_vm6, %v1408_v59, %v1616_v43 }
 0x426   :  { %v1422_v61 = vpack.c.bf16 %v1421_v63, %v1420_v12 }
 0x428   :  { %1499 = vmatmul.bf16.vlgmr.msra.gmra.mxu0 %v1422_v61 }
 0x4a5   :  { %v1500_v20 = vpop.f32.mrf.mxu0 }
 0x4a6   :  { %v1501_v44 = vadd.f32 %v1735_v15, %v1500_v20 }
 0x4a8   :  { %1505 = vst [vmem:[#allocation14] sm:$0xff] %v1501_v44 }
 0x4ad   :  { %v1502_v21 = vpop.f32.mrf.mxu0 }
 0x4ae   :  { %v1503_v3 = vadd.f32 %v1735_v15, %v1502_v21 }
 0x4b0   :  { %1506 = vst [vmem:[#allocation14 + $0x8] sm:$0xff] %v1503_v3 }
 0x4b1   :  { %1519 = dma.vmem_to_hbm [thread:$0]  %s1512_s17, 256, %s1514_s20, [#allocation4], %s1968_s12, %s1968_s12, %s1969_s13  }
 0x4b2   :  { %1956 = dma.done.wait [#allocation4], 256  }
 0x4b3   :  { %1957 = vsyncadd [#allocation4], 4294967040 }
 0x4b4   :  { %1524 = vsyncpa [#allocation3], 1 }
 0x4b5   :  { %1525 = vsyncpa [#allocation6], 1 }
 0x4b6   :  { %1526 = vsyncpa [#allocation9], 1 }
 0x4b7   :  { %1527 = vsyncpa [#allocation12], 1 }
 0x4b8   :  { %1528 = vsyncpa [#allocation4], 1 }

</bundles_post_ra>
